<compile_context>
chip_gen: v5e
topology: v5e:2x2
jax: 0.10.0
libtpu: 0.0.40
codegen_flags: <defaults>
</compile_context>

<pallas_src>
import math

import jax
import jax.numpy as jnp
from jax.experimental import pallas as pl
from jax.experimental.pallas import tpu as pltpu

F32 = jnp.float32
EPS = 1e-5


# ----------------------------- Pallas kernel ------------------------------- #

def _gc_block_kernel(x_ref,
                     att1_ref, w1_ref, s1_ref, sh1_ref,
                     att2_ref, w2_ref, s2_ref, sh2_ref,
                     wcat_ref, csc_ref, csh_ref,
                     wf_ref, fsc_ref, fsh_ref,
                     fused_ref, node_ref, edge_ref, abs_ref):
    """Whole GC_Block forward for one batch element (everything stays in VMEM)."""
    x = x_ref[0]                                        # (n, t)

    # --- GraphConvolution #1 + BN1(+bias folded) + tanh, for node/edge/abs ---
    # (parent-difference for edge/abs is pre-folded into att1 on the host)
    def gc1(idx):
        support = jnp.dot(x, w1_ref[idx], preferred_element_type=jnp.float32)
        o = jnp.dot(att1_ref[idx], support, preferred_element_type=jnp.float32)
        return jnp.tanh(o * s1_ref[idx] + sh1_ref[idx])

    h_node = gc1(0)
    h_edge = gc1(1)
    h_abs = gc1(2)
    node_ref[0] = h_node
    edge_ref[0] = h_edge
    abs_ref[0] = h_abs

    # --- GraphConvolution #2 (layer_nums==1) + BN2 + tanh, node & abs only ---
    # (the edge second layer is dead code: its output is never consumed)
    alpha = 0.2

    def gc2(h, idx):
        sup = (1.0 - alpha) * jnp.dot(att2_ref[idx], h,
                                      preferred_element_type=jnp.float32) + alpha * h
        o = jnp.dot(sup, w2_ref[idx], preferred_element_type=jnp.float32)
        return jnp.tanh(o * s2_ref[idx] + sh2_ref[idx])

    o_node = gc2(h_node, 0)
    o_abs = gc2(h_abs, 1)

    # --- IntegrationGraph (local/global parts == identity):
    #     cat([x,x,x]) @ Wcat == x @ (sum of the three t-wide weight slices) ---
    g = jnp.dot(x, wcat_ref[...], preferred_element_type=jnp.float32)
    graph = jnp.maximum(g * csc_ref[...] + csh_ref[...], 0.0)

    # --- fuse Conv1d(k=3, s=3) over the interleaved (node, abs, graph) rows:
    #     identical to three per-tap (t, t) matmuls; then BN(+bias) + residual ---
    f = (jnp.dot(o_node, wf_ref[0], preferred_element_type=jnp.float32)
         + jnp.dot(o_abs, wf_ref[1], preferred_element_type=jnp.float32)
         + jnp.dot(graph, wf_ref[2], preferred_element_type=jnp.float32))
    fused_ref[0] = f * fsc_ref[...] + fsh_ref[...] + x


# ------------------------------- parameters -------------------------------- #

def _bn_params(num_feats):
    return dict(gamma=jnp.ones((num_feats,), F32),
                beta=jnp.zeros((num_feats,), F32),
                rm=jnp.zeros((num_feats,), F32),
                rv=jnp.ones((num_feats,), F32))


def _bn_fold(p):
    scale = p["gamma"] / jnp.sqrt(p["rv"] + EPS)
    shift = p["beta"] - p["rm"] * scale
    return scale, shift


def make_params(key, n, t):
    """Deterministic parameter init mirroring the PyTorch module shapes."""
    def gc(k):
        stdv = 1.0 / math.sqrt(t)
        k1, k2, k3 = jax.random.split(k, 3)
        return dict(W=jax.random.uniform(k1, (t, t), F32, -stdv, stdv),
                    att=jax.random.uniform(k2, (n, n), F32, -stdv, stdv),
                    bias=jax.random.uniform(k3, (t,), F32, -stdv, stdv))

    keys = jax.random.split(key, 16)
    params = {}
    for i, nm in enumerate(["node", "edge", "abs"]):
        params[nm + "_gc1"] = gc(keys[2 * i])
        params[nm + "_gc2"] = gc(keys[2 * i + 1])
        params[nm + "_bn1"] = _bn_params(n * t)
        params[nm + "_bn2"] = _bn_params(n * t)
    # IntegrationGraph: Conv2d(3t -> t, 1x1, bias=False) + BatchNorm2d(t)
    bc = 1.0 / math.sqrt(3 * t)
    params["cat_conv_w"] = jax.random.uniform(keys[6], (t, 3 * t), F32, -bc, bc)
    params["cat_bn"] = _bn_params(t)
    # fuse: Conv1d(t -> t, kernel_size=3, stride=3) + BatchNorm1d(n*t)
    bf = 1.0 / math.sqrt(t * 3)
    params["fuse_w"] = jax.random.uniform(keys[7], (t, t, 3), F32, -bf, bf)
    params["fuse_b"] = jax.random.uniform(keys[8], (t,), F32, -bf, bf)
    params["fuse_bn"] = _bn_params(n * t)
    return params


def _parents(n):
    if n == 66:
        parents = [8, 0, 1, 2, 8, 4, 5, 6, 9, 8, 9, 10, 8, 12, 13, 14, 14, 8, 17, 18, 19, 19]
        parents_abs = [8] * 22
    elif n == 54:
        parents = [2, 2, 5, 0, 1, 5, 3, 4, 5, 5, 5, 8, 9, 10, 12, 13, 14, 15]
        parents_abs = [5] * 18
    else:
        raise ValueError("n must be 54 or 66")
    return parents, parents_abs


# ------------------------------ forward (Pallas) ---------------------------- #

def gc_block_forward(x, params):
    b, n, t = x.shape
    v = n // 3
    parents, parents_abs = _parents(n)
    names = ["node", "edge", "abs"]

    # (I - P_parent) folded into the gc1 attention matrices.
    eye_n = jnp.eye(n, dtype=F32)

    def minus_parent(par):
        cols = jnp.asarray([c * v + par[u] for c in range(3) for u in range(v)])
        P = jnp.zeros((n, n), F32).at[jnp.arange(n), cols].set(1.0)
        return eye_n - P

    diff_mats = {"node": eye_n,
                 "edge": minus_parent(parents),
                 "abs": minus_parent(parents_abs)}

    att1_l, w1_l, s1_l, sh1_l = [], [], [], []
    for nm in names:
        p1 = params[nm + "_gc1"]
        att1_l.append(jnp.dot(p1["att"], diff_mats[nm]))
        w1_l.append(p1["W"])
        sc, sh = _bn_fold(params[nm + "_bn1"])
        sc = sc.reshape(n, t)
        sh = sh.reshape(n, t)
        s1_l.append(sc)
        sh1_l.append(sh + p1["bias"][None, :] * sc)          # bias folded into shift
    att1_s, w1_s = jnp.stack(att1_l), jnp.stack(w1_l)
    s1_s, sh1_s = jnp.stack(s1_l), jnp.stack(sh1_l)

    # gc2 for node / abs only (edge output is never used downstream).
    beta_c = math.log(1.5 / 1.0 + 1.0)                        # layer_nums + 1 == 1
    eye_t = jnp.eye(t, dtype=F32)
    att2_l, w2_l, s2_l, sh2_l = [], [], [], []
    for nm in ["node", "abs"]:
        p2 = params[nm + "_gc2"]
        att2_l.append(p2["att"])
        w2_l.append(beta_c * p2["W"] + (1.0 - beta_c) * eye_t)
        sc, sh = _bn_fold(params[nm + "_bn2"])
        sc = sc.reshape(n, t)
        sh = sh.reshape(n, t)
        s2_l.append(sc)
        sh2_l.append(sh + p2["bias"][None, :] * sc)           # bias folded into shift
    att2_s, w2_s = jnp.stack(att2_l), jnp.stack(w2_l)
    s2_s, sh2_s = jnp.stack(s2_l), jnp.stack(sh2_l)

    # IntegrationGraph: cat = [x, x, x] along features -> sum the 1x1 conv slices.
    wc = params["cat_conv_w"]                                  # (t, 3t)
    wcat = (wc[:, :t] + wc[:, t:2 * t] + wc[:, 2 * t:]).T      # (t, t), used as x @ wcat
    cat_sc, cat_sh = _bn_fold(params["cat_bn"])
    cat_sc = cat_sc.reshape(1, t)
    cat_sh = cat_sh.reshape(1, t)

    # fuse Conv1d(k=3, s=3) over interleaved (node, abs, graph) rows:
    # three per-tap (t, t) matmuls; BN feature index = out_channel * n + row.
    wf_s = jnp.stack([params["fuse_w"][:, :, k].T for k in range(3)])   # (3, t, t)
    f_sc, f_sh = _bn_fold(params["fuse_bn"])
    f_sc = f_sc.reshape(t, n).T                                          # (n, t)
    f_sh = f_sh.reshape(t, n).T + params["fuse_b"][None, :] * f_sc       # bias folded

    def wspec(shape):
        nd = len(shape)
        return pl.BlockSpec(shape, lambda bi, _nd=nd: (0,) * _nd)

    bspec = pl.BlockSpec((1, n, t), lambda bi: (bi, 0, 0))

    fused, node_init, edge_init, abs_init = pl.pallas_call(
        _gc_block_kernel,
        out_shape=tuple(jax.ShapeDtypeStruct((b, n, t), F32) for _ in range(4)),
        grid=(b,),
        in_specs=[
            bspec,                                             # x
            wspec((3, n, n)), wspec((3, t, t)),                # att1_eff, W1
            wspec((3, n, t)), wspec((3, n, t)),                # bn1 scale / shift
            wspec((2, n, n)), wspec((2, t, t)),                # att2, W2 (node, abs)
            wspec((2, n, t)), wspec((2, n, t)),                # bn2 scale / shift
            wspec((t, t)), wspec((1, t)), wspec((1, t)),       # cat conv + cat bn
            wspec((3, t, t)), wspec((n, t)), wspec((n, t)),    # fuse taps + fuse bn
        ],
        out_specs=tuple(bspec for _ in range(4)),
        compiler_params=pltpu.CompilerParams(
            dimension_semantics=("parallel",)),
    )(x, att1_s, w1_s, s1_s, sh1_s, att2_s, w2_s, s2_s, sh2_s,
      wcat, cat_sc, cat_sh, wf_s, f_sc, f_sh)

    return fused, node_init, edge_init, abs_init


# ---------------------------- pure-JAX reference ---------------------------- #

def gc_block_reference(x, params):
    b, n, t = x.shape
    v = n // 3
    parents, parents_abs = _parents(n)
    x4 = x.reshape(b, 3, v, t)
    inputs = {"node": x,
              "edge": (x4 - x4[:, :, jnp.asarray(parents), :]).reshape(b, n, t),
              "abs": (x4 - x4[:, :, jnp.asarray(parents_abs), :]).reshape(b, n, t)}
    inits, outs = {}, {}
    for nm, inp in inputs.items():
        p1, p2 = params[nm + "_gc1"], params[nm + "_gc2"]
        h = jnp.matmul(p1["att"], jnp.matmul(inp, p1["W"])) + p1["bias"]
        sc, sh = _bn_fold(params[nm + "_bn1"])
        h = jnp.tanh((h.reshape(b, -1) * sc + sh).reshape(b, n, t))
        inits[nm] = h
        alpha, beta = 0.2, math.log(1.5 / 1.0 + 1.0)
        support = (1 - alpha) * jnp.matmul(p2["att"], h) + alpha * h
        h2 = jnp.matmul(support, beta * p2["W"] + (1 - beta) * jnp.eye(t, dtype=F32)) + p2["bias"]
        sc, sh = _bn_fold(params[nm + "_bn2"])
        outs[nm] = jnp.tanh((h2.reshape(b, -1) * sc + sh).reshape(b, n, t))
    cat = jnp.concatenate([x4, x4, x4], axis=-1)                        # (b, 3, v, 3t)
    y = jnp.einsum("bcvk,ok->bcvo", cat, params["cat_conv_w"])
    sc, sh = _bn_fold(params["cat_bn"])
    graph = jnp.maximum(y * sc + sh, 0.0).reshape(b, n, t)
    fusion = jnp.zeros((b, 3, 3 * v, t), F32)
    fusion = fusion.at[:, :, 0::3, :].set(outs["node"].reshape(b, 3, v, t))
    fusion = fusion.at[:, :, 1::3, :].set(outs["abs"].reshape(b, 3, v, t))
    fusion = fusion.at[:, :, 2::3, :].set(graph.reshape(b, 3, v, t))
    seq = fusion.reshape(b, 9 * v, t).transpose(0, 2, 1)                # (b, t, 9v)
    conv = jnp.einsum("oik,bimk->bom", params["fuse_w"],
                      seq.reshape(b, t, 3 * v, 3)) + params["fuse_b"][None, :, None]
    sc, sh = _bn_fold(params["fuse_bn"])
    conv = (conv.reshape(b, -1) * sc + sh).reshape(b, t, 3 * v)
    fused = conv.transpose(0, 2, 1) + x
    return fused, inits["node"], inits["edge"], inits["abs"]


# ----------------------------------- main ----------------------------------- #

if __name__ == "__main__":
    key = jax.random.PRNGKey(0)
    # n = node_n = 54 joints*coords (triggers the n==54 skeleton branch), t = in_features = 16
    b, n, t = 2, 54, 16
    kx, kp = jax.random.split(key)
    x = jax.random.normal(kx, (b, n, t), F32)
    params = make_params(kp, n, t)

    out = jax.jit(gc_block_forward)(x, params)
    out = jax.block_until_ready(out)

    ref = gc_block_reference(x, params)
    for got, want in zip(out, ref):
        assert got.shape == want.shape
        assert jnp.allclose(got, want, atol=1e-4, rtol=1e-4), float(jnp.max(jnp.abs(got - want)))

    print("KERNEL_OK")
</pallas_src>

<mosaic_0001>
module attributes {stable_mosaic.version = 11 : i64} {
  func.func @_gc_block_kernel(%arg0: i32, %arg1: memref<1x54x16xf32, #tpu.memory_space<vmem>>, %arg2: memref<3x54x54xf32, #tpu.memory_space<vmem>>, %arg3: memref<3x16x16xf32, #tpu.memory_space<vmem>>, %arg4: memref<3x54x16xf32, #tpu.memory_space<vmem>>, %arg5: memref<3x54x16xf32, #tpu.memory_space<vmem>>, %arg6: memref<2x54x54xf32, #tpu.memory_space<vmem>>, %arg7: memref<2x16x16xf32, #tpu.memory_space<vmem>>, %arg8: memref<2x54x16xf32, #tpu.memory_space<vmem>>, %arg9: memref<2x54x16xf32, #tpu.memory_space<vmem>>, %arg10: memref<16x16xf32, #tpu.memory_space<vmem>>, %arg11: memref<1x16xf32, #tpu.memory_space<vmem>>, %arg12: memref<1x16xf32, #tpu.memory_space<vmem>>, %arg13: memref<3x16x16xf32, #tpu.memory_space<vmem>>, %arg14: memref<54x16xf32, #tpu.memory_space<vmem>>, %arg15: memref<54x16xf32, #tpu.memory_space<vmem>>, %arg16: memref<1x54x16xf32, #tpu.memory_space<vmem>>, %arg17: memref<1x54x16xf32, #tpu.memory_space<vmem>>, %arg18: memref<1x54x16xf32, #tpu.memory_space<vmem>>, %arg19: memref<1x54x16xf32, #tpu.memory_space<vmem>>) attributes {dimension_semantics = [#tpu.dimension_semantics<parallel>], iteration_bounds = array<i64: 2>, scalar_prefetch = 0 : i64, scratch_operands = 0 : i64, tpu.core_type = #tpu.core_type<tc>, window_params = [{transform_indices = @transform_0, window_bounds = array<i64: 1, 54, 16>}, {pipeline_mode = #tpu.pipeline_mode<synchronous>, transform_indices = @transform_1, window_bounds = array<i64: 3, 54, 54>}, {pipeline_mode = #tpu.pipeline_mode<synchronous>, transform_indices = @transform_2, window_bounds = array<i64: 3, 16, 16>}, {pipeline_mode = #tpu.pipeline_mode<synchronous>, transform_indices = @transform_3, window_bounds = array<i64: 3, 54, 16>}, {pipeline_mode = #tpu.pipeline_mode<synchronous>, transform_indices = @transform_4, window_bounds = array<i64: 3, 54, 16>}, {pipeline_mode = #tpu.pipeline_mode<synchronous>, transform_indices = @transform_5, window_bounds = array<i64: 2, 54, 54>}, {pipeline_mode = #tpu.pipeline_mode<synchronous>, transform_indices = @transform_6, window_bounds = array<i64: 2, 16, 16>}, {pipeline_mode = #tpu.pipeline_mode<synchronous>, transform_indices = @transform_7, window_bounds = array<i64: 2, 54, 16>}, {pipeline_mode = #tpu.pipeline_mode<synchronous>, transform_indices = @transform_8, window_bounds = array<i64: 2, 54, 16>}, {pipeline_mode = #tpu.pipeline_mode<synchronous>, transform_indices = @transform_9, window_bounds = array<i64: 16, 16>}, {pipeline_mode = #tpu.pipeline_mode<synchronous>, transform_indices = @transform_10, window_bounds = array<i64: 1, 16>}, {pipeline_mode = #tpu.pipeline_mode<synchronous>, transform_indices = @transform_11, window_bounds = array<i64: 1, 16>}, {pipeline_mode = #tpu.pipeline_mode<synchronous>, transform_indices = @transform_12, window_bounds = array<i64: 3, 16, 16>}, {pipeline_mode = #tpu.pipeline_mode<synchronous>, transform_indices = @transform_13, window_bounds = array<i64: 54, 16>}, {pipeline_mode = #tpu.pipeline_mode<synchronous>, transform_indices = @transform_14, window_bounds = array<i64: 54, 16>}, {transform_indices = @transform_15, window_bounds = array<i64: 1, 54, 16>}, {transform_indices = @transform_16, window_bounds = array<i64: 1, 54, 16>}, {transform_indices = @transform_17, window_bounds = array<i64: 1, 54, 16>}, {transform_indices = @transform_18, window_bounds = array<i64: 1, 54, 16>}]} {
    %c0 = arith.constant 0 : index
    %c0_0 = arith.constant 0 : index
    %c0_1 = arith.constant 0 : index
    %0 = vector.load %arg1[%c0, %c0_0, %c0_1] : memref<1x54x16xf32, #tpu.memory_space<vmem>>, vector<1x54x16xf32>
    %1 = vector.shape_cast %0 : vector<1x54x16xf32> to vector<54x16xf32>
    %c0_2 = arith.constant 0 : index
    %c0_3 = arith.constant 0 : index
    %c0_4 = arith.constant 0 : index
    %2 = vector.load %arg3[%c0_2, %c0_3, %c0_4] : memref<3x16x16xf32, #tpu.memory_space<vmem>>, vector<1x16x16xf32>
    %3 = vector.shape_cast %2 : vector<1x16x16xf32> to vector<16x16xf32>
    %cst = arith.constant dense<0.000000e+00> : vector<54x16xf32>
    %4 = tpu.matmul %1, %3, %cst {dimension_numbers = #tpu.dot_dimension_numbers<[1], [0], [0], [1], [0, 0, 1, 1], [], []>} : vector<54x16xf32>, vector<16x16xf32>, vector<54x16xf32> -> vector<54x16xf32>
    %c0_5 = arith.constant 0 : index
    %c0_6 = arith.constant 0 : index
    %c0_7 = arith.constant 0 : index
    %5 = vector.load %arg2[%c0_5, %c0_6, %c0_7] : memref<3x54x54xf32, #tpu.memory_space<vmem>>, vector<1x54x54xf32>
    %6 = vector.shape_cast %5 : vector<1x54x54xf32> to vector<54x54xf32>
    %cst_8 = arith.constant dense<0.000000e+00> : vector<54x16xf32>
    %7 = tpu.matmul %6, %4, %cst_8 {dimension_numbers = #tpu.dot_dimension_numbers<[1], [0], [0], [1], [0, 0, 1, 1], [], []>} : vector<54x54xf32>, vector<54x16xf32>, vector<54x16xf32> -> vector<54x16xf32>
    %c0_9 = arith.constant 0 : index
    %c0_10 = arith.constant 0 : index
    %c0_11 = arith.constant 0 : index
    %8 = vector.load %arg4[%c0_9, %c0_10, %c0_11] : memref<3x54x16xf32, #tpu.memory_space<vmem>>, vector<1x54x16xf32>
    %9 = vector.shape_cast %8 : vector<1x54x16xf32> to vector<54x16xf32>
    %10 = arith.mulf %7, %9 : vector<54x16xf32>
    %c0_12 = arith.constant 0 : index
    %c0_13 = arith.constant 0 : index
    %c0_14 = arith.constant 0 : index
    %11 = vector.load %arg5[%c0_12, %c0_13, %c0_14] : memref<3x54x16xf32, #tpu.memory_space<vmem>>, vector<1x54x16xf32>
    %12 = vector.shape_cast %11 : vector<1x54x16xf32> to vector<54x16xf32>
    %13 = arith.addf %10, %12 : vector<54x16xf32>
    %14 = math.tanh %13 : vector<54x16xf32>
    %c1 = arith.constant 1 : index
    %c0_15 = arith.constant 0 : index
    %c0_16 = arith.constant 0 : index
    %15 = vector.load %arg3[%c1, %c0_15, %c0_16] : memref<3x16x16xf32, #tpu.memory_space<vmem>>, vector<1x16x16xf32>
    %16 = vector.shape_cast %15 : vector<1x16x16xf32> to vector<16x16xf32>
    %cst_17 = arith.constant dense<0.000000e+00> : vector<54x16xf32>
    %17 = tpu.matmul %1, %16, %cst_17 {dimension_numbers = #tpu.dot_dimension_numbers<[1], [0], [0], [1], [0, 0, 1, 1], [], []>} : vector<54x16xf32>, vector<16x16xf32>, vector<54x16xf32> -> vector<54x16xf32>
    %c1_18 = arith.constant 1 : index
    %c0_19 = arith.constant 0 : index
    %c0_20 = arith.constant 0 : index
    %18 = vector.load %arg2[%c1_18, %c0_19, %c0_20] : memref<3x54x54xf32, #tpu.memory_space<vmem>>, vector<1x54x54xf32>
    %19 = vector.shape_cast %18 : vector<1x54x54xf32> to vector<54x54xf32>
    %cst_21 = arith.constant dense<0.000000e+00> : vector<54x16xf32>
    %20 = tpu.matmul %19, %17, %cst_21 {dimension_numbers = #tpu.dot_dimension_numbers<[1], [0], [0], [1], [0, 0, 1, 1], [], []>} : vector<54x54xf32>, vector<54x16xf32>, vector<54x16xf32> -> vector<54x16xf32>
    %c1_22 = arith.constant 1 : index
    %c0_23 = arith.constant 0 : index
    %c0_24 = arith.constant 0 : index
    %21 = vector.load %arg4[%c1_22, %c0_23, %c0_24] : memref<3x54x16xf32, #tpu.memory_space<vmem>>, vector<1x54x16xf32>
    %22 = vector.shape_cast %21 : vector<1x54x16xf32> to vector<54x16xf32>
    %23 = arith.mulf %20, %22 : vector<54x16xf32>
    %c1_25 = arith.constant 1 : index
    %c0_26 = arith.constant 0 : index
    %c0_27 = arith.constant 0 : index
    %24 = vector.load %arg5[%c1_25, %c0_26, %c0_27] : memref<3x54x16xf32, #tpu.memory_space<vmem>>, vector<1x54x16xf32>
    %25 = vector.shape_cast %24 : vector<1x54x16xf32> to vector<54x16xf32>
    %26 = arith.addf %23, %25 : vector<54x16xf32>
    %27 = math.tanh %26 : vector<54x16xf32>
    %c2 = arith.constant 2 : index
    %c0_28 = arith.constant 0 : index
    %c0_29 = arith.constant 0 : index
    %28 = vector.load %arg3[%c2, %c0_28, %c0_29] : memref<3x16x16xf32, #tpu.memory_space<vmem>>, vector<1x16x16xf32>
    %29 = vector.shape_cast %28 : vector<1x16x16xf32> to vector<16x16xf32>
    %cst_30 = arith.constant dense<0.000000e+00> : vector<54x16xf32>
    %30 = tpu.matmul %1, %29, %cst_30 {dimension_numbers = #tpu.dot_dimension_numbers<[1], [0], [0], [1], [0, 0, 1, 1], [], []>} : vector<54x16xf32>, vector<16x16xf32>, vector<54x16xf32> -> vector<54x16xf32>
    %c2_31 = arith.constant 2 : index
    %c0_32 = arith.constant 0 : index
    %c0_33 = arith.constant 0 : index
    %31 = vector.load %arg2[%c2_31, %c0_32, %c0_33] : memref<3x54x54xf32, #tpu.memory_space<vmem>>, vector<1x54x54xf32>
    %32 = vector.shape_cast %31 : vector<1x54x54xf32> to vector<54x54xf32>
    %cst_34 = arith.constant dense<0.000000e+00> : vector<54x16xf32>
    %33 = tpu.matmul %32, %30, %cst_34 {dimension_numbers = #tpu.dot_dimension_numbers<[1], [0], [0], [1], [0, 0, 1, 1], [], []>} : vector<54x54xf32>, vector<54x16xf32>, vector<54x16xf32> -> vector<54x16xf32>
    %c2_35 = arith.constant 2 : index
    %c0_36 = arith.constant 0 : index
    %c0_37 = arith.constant 0 : index
    %34 = vector.load %arg4[%c2_35, %c0_36, %c0_37] : memref<3x54x16xf32, #tpu.memory_space<vmem>>, vector<1x54x16xf32>
    %35 = vector.shape_cast %34 : vector<1x54x16xf32> to vector<54x16xf32>
    %36 = arith.mulf %33, %35 : vector<54x16xf32>
    %c2_38 = arith.constant 2 : index
    %c0_39 = arith.constant 0 : index
    %c0_40 = arith.constant 0 : index
    %37 = vector.load %arg5[%c2_38, %c0_39, %c0_40] : memref<3x54x16xf32, #tpu.memory_space<vmem>>, vector<1x54x16xf32>
    %38 = vector.shape_cast %37 : vector<1x54x16xf32> to vector<54x16xf32>
    %39 = arith.addf %36, %38 : vector<54x16xf32>
    %40 = math.tanh %39 : vector<54x16xf32>
    %c0_41 = arith.constant 0 : index
    %c0_42 = arith.constant 0 : index
    %c0_43 = arith.constant 0 : index
    %41 = vector.load %arg17[%c0_41, %c0_42, %c0_43] : memref<1x54x16xf32, #tpu.memory_space<vmem>>, vector<1x54x16xf32>
    %42 = vector.shape_cast %41 : vector<1x54x16xf32> to vector<54x16xf32>
    %43 = vector.shape_cast %14 : vector<54x16xf32> to vector<1x54x16xf32>
    tpu.vector_store %arg17[%c0_41, %c0_42, %c0_43], %43 {strides = array<i32>} : memref<1x54x16xf32, #tpu.memory_space<vmem>>, vector<1x54x16xf32>,
    %c0_44 = arith.constant 0 : index
    %c0_45 = arith.constant 0 : index
    %c0_46 = arith.constant 0 : index
    %44 = vector.load %arg18[%c0_44, %c0_45, %c0_46] : memref<1x54x16xf32, #tpu.memory_space<vmem>>, vector<1x54x16xf32>
    %45 = vector.shape_cast %44 : vector<1x54x16xf32> to vector<54x16xf32>
    %46 = vector.shape_cast %27 : vector<54x16xf32> to vector<1x54x16xf32>
    tpu.vector_store %arg18[%c0_44, %c0_45, %c0_46], %46 {strides = array<i32>} : memref<1x54x16xf32, #tpu.memory_space<vmem>>, vector<1x54x16xf32>,
    %c0_47 = arith.constant 0 : index
    %c0_48 = arith.constant 0 : index
    %c0_49 = arith.constant 0 : index
    %47 = vector.load %arg19[%c0_47, %c0_48, %c0_49] : memref<1x54x16xf32, #tpu.memory_space<vmem>>, vector<1x54x16xf32>
    %48 = vector.shape_cast %47 : vector<1x54x16xf32> to vector<54x16xf32>
    %49 = vector.shape_cast %40 : vector<54x16xf32> to vector<1x54x16xf32>
    tpu.vector_store %arg19[%c0_47, %c0_48, %c0_49], %49 {strides = array<i32>} : memref<1x54x16xf32, #tpu.memory_space<vmem>>, vector<1x54x16xf32>,
    %c0_50 = arith.constant 0 : index
    %c0_51 = arith.constant 0 : index
    %c0_52 = arith.constant 0 : index
    %50 = vector.load %arg6[%c0_50, %c0_51, %c0_52] : memref<2x54x54xf32, #tpu.memory_space<vmem>>, vector<1x54x54xf32>
    %51 = vector.shape_cast %50 : vector<1x54x54xf32> to vector<54x54xf32>
    %cst_53 = arith.constant dense<0.000000e+00> : vector<54x16xf32>
    %52 = tpu.matmul %51, %14, %cst_53 {dimension_numbers = #tpu.dot_dimension_numbers<[1], [0], [0], [1], [0, 0, 1, 1], [], []>} : vector<54x54xf32>, vector<54x16xf32>, vector<54x16xf32> -> vector<54x16xf32>
    %cst_54 = arith.constant 8.000000e-01 : f32
    %53 = vector.broadcast %cst_54 : f32 to vector<54x16xf32>
    %54 = arith.mulf %53, %52 : vector<54x16xf32>
    %cst_55 = arith.constant 2.000000e-01 : f32
    %55 = vector.broadcast %cst_55 : f32 to vector<54x16xf32>
    %56 = arith.mulf %55, %14 : vector<54x16xf32>
    %57 = arith.addf %54, %56 : vector<54x16xf32>
    %c0_56 = arith.constant 0 : index
    %c0_57 = arith.constant 0 : index
    %c0_58 = arith.constant 0 : index
    %58 = vector.load %arg7[%c0_56, %c0_57, %c0_58] : memref<2x16x16xf32, #tpu.memory_space<vmem>>, vector<1x16x16xf32>
    %59 = vector.shape_cast %58 : vector<1x16x16xf32> to vector<16x16xf32>
    %cst_59 = arith.constant dense<0.000000e+00> : vector<54x16xf32>
    %60 = tpu.matmul %57, %59, %cst_59 {dimension_numbers = #tpu.dot_dimension_numbers<[1], [0], [0], [1], [0, 0, 1, 1], [], []>} : vector<54x16xf32>, vector<16x16xf32>, vector<54x16xf32> -> vector<54x16xf32>
    %c0_60 = arith.constant 0 : index
    %c0_61 = arith.constant 0 : index
    %c0_62 = arith.constant 0 : index
    %61 = vector.load %arg8[%c0_60, %c0_61, %c0_62] : memref<2x54x16xf32, #tpu.memory_space<vmem>>, vector<1x54x16xf32>
    %62 = vector.shape_cast %61 : vector<1x54x16xf32> to vector<54x16xf32>
    %63 = arith.mulf %60, %62 : vector<54x16xf32>
    %c0_63 = arith.constant 0 : index
    %c0_64 = arith.constant 0 : index
    %c0_65 = arith.constant 0 : index
    %64 = vector.load %arg9[%c0_63, %c0_64, %c0_65] : memref<2x54x16xf32, #tpu.memory_space<vmem>>, vector<1x54x16xf32>
    %65 = vector.shape_cast %64 : vector<1x54x16xf32> to vector<54x16xf32>
    %66 = arith.addf %63, %65 : vector<54x16xf32>
    %67 = math.tanh %66 : vector<54x16xf32>
    %c1_66 = arith.constant 1 : index
    %c0_67 = arith.constant 0 : index
    %c0_68 = arith.constant 0 : index
    %68 = vector.load %arg6[%c1_66, %c0_67, %c0_68] : memref<2x54x54xf32, #tpu.memory_space<vmem>>, vector<1x54x54xf32>
    %69 = vector.shape_cast %68 : vector<1x54x54xf32> to vector<54x54xf32>
    %cst_69 = arith.constant dense<0.000000e+00> : vector<54x16xf32>
    %70 = tpu.matmul %69, %40, %cst_69 {dimension_numbers = #tpu.dot_dimension_numbers<[1], [0], [0], [1], [0, 0, 1, 1], [], []>} : vector<54x54xf32>, vector<54x16xf32>, vector<54x16xf32> -> vector<54x16xf32>
    %cst_70 = arith.constant 8.000000e-01 : f32
    %71 = vector.broadcast %cst_70 : f32 to vector<54x16xf32>
    %72 = arith.mulf %71, %70 : vector<54x16xf32>
    %cst_71 = arith.constant 2.000000e-01 : f32
    %73 = vector.broadcast %cst_71 : f32 to vector<54x16xf32>
    %74 = arith.mulf %73, %40 : vector<54x16xf32>
    %75 = arith.addf %72, %74 : vector<54x16xf32>
    %c1_72 = arith.constant 1 : index
    %c0_73 = arith.constant 0 : index
    %c0_74 = arith.constant 0 : index
    %76 = vector.load %arg7[%c1_72, %c0_73, %c0_74] : memref<2x16x16xf32, #tpu.memory_space<vmem>>, vector<1x16x16xf32>
    %77 = vector.shape_cast %76 : vector<1x16x16xf32> to vector<16x16xf32>
    %cst_75 = arith.constant dense<0.000000e+00> : vector<54x16xf32>
    %78 = tpu.matmul %75, %77, %cst_75 {dimension_numbers = #tpu.dot_dimension_numbers<[1], [0], [0], [1], [0, 0, 1, 1], [], []>} : vector<54x16xf32>, vector<16x16xf32>, vector<54x16xf32> -> vector<54x16xf32>
    %c1_76 = arith.constant 1 : index
    %c0_77 = arith.constant 0 : index
    %c0_78 = arith.constant 0 : index
    %79 = vector.load %arg8[%c1_76, %c0_77, %c0_78] : memref<2x54x16xf32, #tpu.memory_space<vmem>>, vector<1x54x16xf32>
    %80 = vector.shape_cast %79 : vector<1x54x16xf32> to vector<54x16xf32>
    %81 = arith.mulf %78, %80 : vector<54x16xf32>
    %c1_79 = arith.constant 1 : index
    %c0_80 = arith.constant 0 : index
    %c0_81 = arith.constant 0 : index
    %82 = vector.load %arg9[%c1_79, %c0_80, %c0_81] : memref<2x54x16xf32, #tpu.memory_space<vmem>>, vector<1x54x16xf32>
    %83 = vector.shape_cast %82 : vector<1x54x16xf32> to vector<54x16xf32>
    %84 = arith.addf %81, %83 : vector<54x16xf32>
    %85 = math.tanh %84 : vector<54x16xf32>
    %c0_82 = arith.constant 0 : index
    %c0_83 = arith.constant 0 : index
    %86 = vector.load %arg10[%c0_82, %c0_83] : memref<16x16xf32, #tpu.memory_space<vmem>>, vector<16x16xf32>
    %cst_84 = arith.constant dense<0.000000e+00> : vector<54x16xf32>
    %87 = tpu.matmul %1, %86, %cst_84 {dimension_numbers = #tpu.dot_dimension_numbers<[1], [0], [0], [1], [0, 0, 1, 1], [], []>} : vector<54x16xf32>, vector<16x16xf32>, vector<54x16xf32> -> vector<54x16xf32>
    %c0_85 = arith.constant 0 : index
    %c0_86 = arith.constant 0 : index
    %88 = vector.load %arg11[%c0_85, %c0_86] : memref<1x16xf32, #tpu.memory_space<vmem>>, vector<1x16xf32>
    %89 = vector.broadcast %88 : vector<1x16xf32> to vector<54x16xf32>
    %90 = arith.mulf %87, %89 : vector<54x16xf32>
    %c0_87 = arith.constant 0 : index
    %c0_88 = arith.constant 0 : index
    %91 = vector.load %arg12[%c0_87, %c0_88] : memref<1x16xf32, #tpu.memory_space<vmem>>, vector<1x16xf32>
    %92 = vector.broadcast %91 : vector<1x16xf32> to vector<54x16xf32>
    %93 = arith.addf %90, %92 : vector<54x16xf32>
    %cst_89 = arith.constant 0.000000e+00 : f32
    %94 = vector.broadcast %cst_89 : f32 to vector<54x16xf32>
    %95 = arith.maximumf %93, %94 : vector<54x16xf32>
    %c0_90 = arith.constant 0 : index
    %c0_91 = arith.constant 0 : index
    %c0_92 = arith.constant 0 : index
    %96 = vector.load %arg13[%c0_90, %c0_91, %c0_92] : memref<3x16x16xf32, #tpu.memory_space<vmem>>, vector<1x16x16xf32>
    %97 = vector.shape_cast %96 : vector<1x16x16xf32> to vector<16x16xf32>
    %cst_93 = arith.constant dense<0.000000e+00> : vector<54x16xf32>
    %98 = tpu.matmul %67, %97, %cst_93 {dimension_numbers = #tpu.dot_dimension_numbers<[1], [0], [0], [1], [0, 0, 1, 1], [], []>} : vector<54x16xf32>, vector<16x16xf32>, vector<54x16xf32> -> vector<54x16xf32>
    %c1_94 = arith.constant 1 : index
    %c0_95 = arith.constant 0 : index
    %c0_96 = arith.constant 0 : index
    %99 = vector.load %arg13[%c1_94, %c0_95, %c0_96] : memref<3x16x16xf32, #tpu.memory_space<vmem>>, vector<1x16x16xf32>
    %100 = vector.shape_cast %99 : vector<1x16x16xf32> to vector<16x16xf32>
    %cst_97 = arith.constant dense<0.000000e+00> : vector<54x16xf32>
    %101 = tpu.matmul %85, %100, %cst_97 {dimension_numbers = #tpu.dot_dimension_numbers<[1], [0], [0], [1], [0, 0, 1, 1], [], []>} : vector<54x16xf32>, vector<16x16xf32>, vector<54x16xf32> -> vector<54x16xf32>
    %102 = arith.addf %98, %101 : vector<54x16xf32>
    %c2_98 = arith.constant 2 : index
    %c0_99 = arith.constant 0 : index
    %c0_100 = arith.constant 0 : index
    %103 = vector.load %arg13[%c2_98, %c0_99, %c0_100] : memref<3x16x16xf32, #tpu.memory_space<vmem>>, vector<1x16x16xf32>
    %104 = vector.shape_cast %103 : vector<1x16x16xf32> to vector<16x16xf32>
    %cst_101 = arith.constant dense<0.000000e+00> : vector<54x16xf32>
    %105 = tpu.matmul %95, %104, %cst_101 {dimension_numbers = #tpu.dot_dimension_numbers<[1], [0], [0], [1], [0, 0, 1, 1], [], []>} : vector<54x16xf32>, vector<16x16xf32>, vector<54x16xf32> -> vector<54x16xf32>
    %106 = arith.addf %102, %105 : vector<54x16xf32>
    %c0_102 = arith.constant 0 : index
    %c0_103 = arith.constant 0 : index
    %107 = vector.load %arg14[%c0_102, %c0_103] : memref<54x16xf32, #tpu.memory_space<vmem>>, vector<54x16xf32>
    %108 = arith.mulf %106, %107 : vector<54x16xf32>
    %c0_104 = arith.constant 0 : index
    %c0_105 = arith.constant 0 : index
    %109 = vector.load %arg15[%c0_104, %c0_105] : memref<54x16xf32, #tpu.memory_space<vmem>>, vector<54x16xf32>
    %110 = arith.addf %108, %109 : vector<54x16xf32>
    %111 = arith.addf %110, %1 : vector<54x16xf32>
    %c0_106 = arith.constant 0 : index
    %c0_107 = arith.constant 0 : index
    %c0_108 = arith.constant 0 : index
    %112 = vector.load %arg16[%c0_106, %c0_107, %c0_108] : memref<1x54x16xf32, #tpu.memory_space<vmem>>, vector<1x54x16xf32>
    %113 = vector.shape_cast %112 : vector<1x54x16xf32> to vector<54x16xf32>
    %114 = vector.shape_cast %111 : vector<54x16xf32> to vector<1x54x16xf32>
    tpu.vector_store %arg16[%c0_106, %c0_107, %c0_108], %114 {strides = array<i32>} : memref<1x54x16xf32, #tpu.memory_space<vmem>>, vector<1x54x16xf32>,
    return
  }
  func.func @transform_0(%arg0: i32) -> (i32, i32, i32) {
    %c0_i32 = arith.constant 0 : i32
    %c0_i32_0 = arith.constant 0 : i32
    %c0_i32_1 = arith.constant 0 : i32
    return %arg0, %c0_i32, %c0_i32_0 : i32, i32, i32
  }
  func.func @transform_1(%arg0: i32) -> (i32, i32, i32) {
    %c0_i32 = arith.constant 0 : i32
    %c0_i32_0 = arith.constant 0 : i32
    %c0_i32_1 = arith.constant 0 : i32
    %c0_i32_2 = arith.constant 0 : i32
    return %c0_i32, %c0_i32_0, %c0_i32_1 : i32, i32, i32
  }
  func.func @transform_2(%arg0: i32) -> (i32, i32, i32) {
    %c0_i32 = arith.constant 0 : i32
    %c0_i32_0 = arith.constant 0 : i32
    %c0_i32_1 = arith.constant 0 : i32
    %c0_i32_2 = arith.constant 0 : i32
    return %c0_i32, %c0_i32_0, %c0_i32_1 : i32, i32, i32
  }
  func.func @transform_3(%arg0: i32) -> (i32, i32, i32) {
    %c0_i32 = arith.constant 0 : i32
    %c0_i32_0 = arith.constant 0 : i32
    %c0_i32_1 = arith.constant 0 : i32
    %c0_i32_2 = arith.constant 0 : i32
    return %c0_i32, %c0_i32_0, %c0_i32_1 : i32, i32, i32
  }
  func.func @transform_4(%arg0: i32) -> (i32, i32, i32) {
    %c0_i32 = arith.constant 0 : i32
    %c0_i32_0 = arith.constant 0 : i32
    %c0_i32_1 = arith.constant 0 : i32
    %c0_i32_2 = arith.constant 0 : i32
    return %c0_i32, %c0_i32_0, %c0_i32_1 : i32, i32, i32
  }
  func.func @transform_5(%arg0: i32) -> (i32, i32, i32) {
    %c0_i32 = arith.constant 0 : i32
    %c0_i32_0 = arith.constant 0 : i32
    %c0_i32_1 = arith.constant 0 : i32
    %c0_i32_2 = arith.constant 0 : i32
    return %c0_i32, %c0_i32_0, %c0_i32_1 : i32, i32, i32
  }
  func.func @transform_6(%arg0: i32) -> (i32, i32, i32) {
    %c0_i32 = arith.constant 0 : i32
    %c0_i32_0 = arith.constant 0 : i32
    %c0_i32_1 = arith.constant 0 : i32
    %c0_i32_2 = arith.constant 0 : i32
    return %c0_i32, %c0_i32_0, %c0_i32_1 : i32, i32, i32
  }
  func.func @transform_7(%arg0: i32) -> (i32, i32, i32) {
    %c0_i32 = arith.constant 0 : i32
    %c0_i32_0 = arith.constant 0 : i32
    %c0_i32_1 = arith.constant 0 : i32
    %c0_i32_2 = arith.constant 0 : i32
    return %c0_i32, %c0_i32_0, %c0_i32_1 : i32, i32, i32
  }
  func.func @transform_8(%arg0: i32) -> (i32, i32, i32) {
    %c0_i32 = arith.constant 0 : i32
    %c0_i32_0 = arith.constant 0 : i32
    %c0_i32_1 = arith.constant 0 : i32
    %c0_i32_2 = arith.constant 0 : i32
    return %c0_i32, %c0_i32_0, %c0_i32_1 : i32, i32, i32
  }
  func.func @transform_9(%arg0: i32) -> (i32, i32) {
    %c0_i32 = arith.constant 0 : i32
    %c0_i32_0 = arith.constant 0 : i32
    %c0_i32_1 = arith.constant 0 : i32
    return %c0_i32, %c0_i32_0 : i32, i32
  }
  func.func @transform_10(%arg0: i32) -> (i32, i32) {
    %c0_i32 = arith.constant 0 : i32
    %c0_i32_0 = arith.constant 0 : i32
    %c0_i32_1 = arith.constant 0 : i32
    return %c0_i32, %c0_i32_0 : i32, i32
  }
  func.func @transform_11(%arg0: i32) -> (i32, i32) {
    %c0_i32 = arith.constant 0 : i32
    %c0_i32_0 = arith.constant 0 : i32
    %c0_i32_1 = arith.constant 0 : i32
    return %c0_i32, %c0_i32_0 : i32, i32
  }
  func.func @transform_12(%arg0: i32) -> (i32, i32, i32) {
    %c0_i32 = arith.constant 0 : i32
    %c0_i32_0 = arith.constant 0 : i32
    %c0_i32_1 = arith.constant 0 : i32
    %c0_i32_2 = arith.constant 0 : i32
    return %c0_i32, %c0_i32_0, %c0_i32_1 : i32, i32, i32
  }
  func.func @transform_13(%arg0: i32) -> (i32, i32) {
    %c0_i32 = arith.constant 0 : i32
    %c0_i32_0 = arith.constant 0 : i32
    %c0_i32_1 = arith.constant 0 : i32
    return %c0_i32, %c0_i32_0 : i32, i32
  }
  func.func @transform_14(%arg0: i32) -> (i32, i32) {
    %c0_i32 = arith.constant 0 : i32
    %c0_i32_0 = arith.constant 0 : i32
    %c0_i32_1 = arith.constant 0 : i32
    return %c0_i32, %c0_i32_0 : i32, i32
  }
  func.func @transform_15(%arg0: i32) -> (i32, i32, i32) {
    %c0_i32 = arith.constant 0 : i32
    %c0_i32_0 = arith.constant 0 : i32
    %c0_i32_1 = arith.constant 0 : i32
    return %arg0, %c0_i32, %c0_i32_0 : i32, i32, i32
  }
  func.func @transform_16(%arg0: i32) -> (i32, i32, i32) {
    %c0_i32 = arith.constant 0 : i32
    %c0_i32_0 = arith.constant 0 : i32
    %c0_i32_1 = arith.constant 0 : i32
    return %arg0, %c0_i32, %c0_i32_0 : i32, i32, i32
  }
  func.func @transform_17(%arg0: i32) -> (i32, i32, i32) {
    %c0_i32 = arith.constant 0 : i32
    %c0_i32_0 = arith.constant 0 : i32
    %c0_i32_1 = arith.constant 0 : i32
    return %arg0, %c0_i32, %c0_i32_0 : i32, i32, i32
  }
  func.func @transform_18(%arg0: i32) -> (i32, i32, i32) {
    %c0_i32 = arith.constant 0 : i32
    %c0_i32_0 = arith.constant 0 : i32
    %c0_i32_1 = arith.constant 0 : i32
    return %arg0, %c0_i32, %c0_i32_0 : i32, i32, i32
  }
}

</mosaic_0001>

<bundles_post_ra>
// kernel: gc_block_forward.1
= control target key start
LH: loop header
LB: loop body
LE: loop exit
PB: predicated region body
PF: predicated region fallthrough
CT: control target
= control target key end

     0   :  { %s2322_s27 = smov 0   ;;  %s3085_s0 = inlined_call_operand.vmem [shape: f32[2,54,16], index: 0, kind: input, shape index: {}]   ;;  %s3086_s1 = inlined_call_operand.vmem [shape: f32[3,54,54], index: 1, kind: input, shape index: {}]   ;;  %s3087_s2 = inlined_call_operand.vmem [shape: f32[3,16,16], index: 2, kind: input, shape index: {}]   ;;  %s3088_s3 = inlined_call_operand.vmem [shape: f32[3,54,16], index: 3, kind: input, shape index: {}]   ;;  %s3089_s4 = inlined_call_operand.vmem [shape: f32[3,54,16], index: 4, kind: input, shape index: {}]   ;;  %s3090_s5 = inlined_call_operand.vmem [shape: f32[2,54,54], index: 5, kind: input, shape index: {}]   ;;  %s3091_s6 = inlined_call_operand.vmem [shape: f32[2,16,16], index: 6, kind: input, shape index: {}]   ;;  %s3092_s7 = inlined_call_operand.vmem [shape: f32[2,54,16], index: 7, kind: input, shape index: {}]   ;;  %s3093_s8 = inlined_call_operand.vmem [shape: f32[2,54,16], index: 8, kind: input, shape index: {}]   ;;  %s3094_s9 = inlined_call_operand.vmem [shape: f32[16,16], index: 9, kind: input, shape index: {}]   ;;  %s3095_s10 = inlined_call_operand.vmem [shape: f32[1,16], index: 10, kind: input, shape index: {}]   ;;  %s3096_s11 = inlined_call_operand.vmem [shape: f32[1,16], index: 11, kind: input, shape index: {}]   ;;  %s3097_s12 = inlined_call_operand.vmem [shape: f32[3,16,16], index: 12, kind: input, shape index: {}]   ;;  %s3098_s13 = inlined_call_operand.vmem [shape: f32[54,16], index: 13, kind: input, shape index: {}]   ;;  %s3099_s14 = inlined_call_operand.vmem [shape: f32[54,16], index: 14, kind: input, shape index: {}]   ;;  %s3100_s15 = inlined_call_operand.vmem [shape: f32[2,54,16], index: 15, kind: output, shape index: {0}]   ;;  %s3101_s16 = inlined_call_operand.vmem [shape: f32[2,54,16], index: 16, kind: output, shape index: {1}]   ;;  %s3102_s17 = inlined_call_operand.vmem [shape: f32[2,54,16], index: 17, kind: output, shape index: {2}]   ;;  %s3103_s18 = inlined_call_operand.vmem [shape: f32[2,54,16], index: 18, kind: output, shape index: {3}]  }
   0x1   :  { %3106 = sst [smem:[#allocation2_spill]] %s3085_s0 }
   0x2   :  { %3107 = sst [smem:[#allocation3_spill]] %s3086_s1 }
   0x3   :  { %3108 = sst [smem:[#allocation4_spill]] %s3087_s2 }
   0x4 LB: > { %s1939_s28 = sadd.s32 4294967295, %s2225_s27   ;;  %p1943_p0 = scmp.ge.s32.totalorder %s2225_s27, 1  ;;  %s2225_s27 = sphi %s2322_s27, %s29_s27  }
   0x5   : > { %p519_p1 = scmp.lt.s32.totalorder %s2225_s27, 3 }
   0x7   : > { %p520_p2 = pnand %p1943_p0, %p519_p1 }
   0x8   : > { %s3109_s0 = sld [smem:[#allocation4_spill]] (!%p520_p2)  ;;  %p588_p3 = scmp.lt.s32.totalorder (!%p520_p2), %s1939_s28, 1 }
   0x9   : > { %523 = sbr.rel (%p520_p2) target bundleno = 907 (0x38b), region = 80  ;;  %s3110_s26 = sld [smem:[#allocation2_spill]] (!%p520_p2) }
   0xa   : > { %s3111_s22 = sld [smem:[#allocation3_spill]] (!%p520_p2) }
   0xe   : > { %v621_v0 = vld [vmem:[%s3109_s0 + $0x8] sm:$0xff]  ;;  %v620_v1 = vld [vmem:[%s3109_s0] sm:$0xff]  ;;  %s3113_s28 = smov (!%p588_p3, %s1939_s28), 1  ;;  %vm622_vm0 = vcmask 130048   ;;  %v1965_v11 = vld [vmem:[%s3109_s0 + $0x18] sm:$0xff]  ;;  %vm711_vm1 = vcmask 1045504  }
   0xf   : > { %658 = vmatpush.msra.mxu0 %v621_v0  ;;  %2127 = vmatpush.msra.mxu1 %v621_v0  ;;  %v2003_v2 = vld [vmem:[%s3109_s0 + $0x28] sm:$0xff]  ;;  %v2002_v3 = vld [vmem:[%s3109_s0 + $0x20] sm:$0xff]  ;;  %s2342_s23 = smul.u32 56, %s3113_s28  ;;  %v1964_v12 = vld [vmem:[%s3109_s0 + $0x10] sm:$0xff]  ;;  %vm689_vm2 = vcmask 441344   ;;  %vm1090_vm3 = vcmask 128000  }
  0x10   : > { %805 = vmatpush.msra.mxu2 %v1965_v11  ;;  %2129 = vmatpush.msra.mxu3 %v1965_v11  ;;  %v682_v20 = vld [vmem:[%s3111_s22] sm:$0xff]  ;;  %v683_v22 = vld [vmem:[%s3111_s22 + $0x8] sm:$0xff]  ;;  %v684_v24 = vld [vmem:[%s3111_s22 + $0x10] sm:$0xff] }
  0x11   : > { %659 = vmatpush.msra.mxu0 %v620_v1  ;;  %2128 = vmatpush.msra.mxu1 %v620_v1  ;;  %s2348_s29 = scalar_lea.vmem %s3110_s26, %s2342_s23  ;;  %v685_v26 = vld [vmem:[%s3111_s22 + $0x18] sm:$0xff]  ;;  %v686_v28 = vld [vmem:[%s3111_s22 + $0x20] sm:$0xff]  ;;  %v687_v30 = vld [vmem:[%s3111_s22 + $0x28] sm:$0xff]  ;;  %s2494_s19 = scalar_lea.vmem %s3101_s16, %s2342_s23 }
  0x12   : > { %v2351_v4 = vld [vmem:[%s2348_s29] sm:$0xff]  ;;  %v2361_v6 = vld [vmem:[%s2348_s29 + $0x8] sm:$0xff]  ;;  %v2371_v8 = vld [vmem:[%s2348_s29 + $0x10] sm:$0xff]  ;;  %806 = vmatpush.msra.mxu2 %v1964_v12  ;;  %2130 = vmatpush.msra.mxu3 %v1964_v12  ;;  %s2586_s25 = scalar_lea.vmem %s3103_s18, %s2342_s23  ;;  %s3023_s24 = scalar_lea.vmem %s3100_s15, %s2342_s23 }
  0x13   : > { %953 = vmatpush.msrb.mxu0 %v2003_v2  ;;  %v2354_v5 = vld [vmem:[%s2348_s29 + $0x20] sm:$0xff]  ;;  %v2364_v7 = vld [vmem:[%s2348_s29 + $0x28] sm:$0xff]  ;;  %v2374_v9 = vld [vmem:[%s2348_s29 + $0x30] sm:$0x3f]  ;;  %1966 = vmatmul.msk.f32.vlgmr.msra.gmra.mxu2 %vm622_vm0, %v2351_v4 }
  0x14   : > { %1949 = vmatmul.msk.f32.vlgmr.msra.gmra.mxu0 %vm622_vm0, %v2351_v4  ;;  %1953 = vmatmul.msk.f32.vlgmr.msra.gmra.mxu1 %vm622_vm0, %v2354_v5  ;;  %v2381_v10 = vld [vmem:[%s2348_s29 + $0x18] sm:$0xff]  ;;  %v688_v32 = vld [vmem:[%s3111_s22 + $0x30] sm:$0x3f]  ;;  %v2013_v36 = vld [vmem:[%s3111_s22 + $0x80] sm:$0xff] }
  0x15   : > { %954 = vmatpush.msrb.mxu0 %v2002_v3  ;;  %1970 = vmatmul.msk.f32.vlgmr.msra.gmra.mxu3 %vm622_vm0, %v2354_v5  ;;  %v2011_v34 = vld [vmem:[%s3111_s22 + $0x70] sm:$0xff]  ;;  %v2012_v35 = vld [vmem:[%s3111_s22 + $0x78] sm:$0xff]  ;;  %v2014_v37 = vld [vmem:[%s3111_s22 + $0x88] sm:$0xff] }
  0x16   : > { %v2015_v38 = vld [vmem:[%s3111_s22 + $0x90] sm:$0xff]  ;;  %v2016_v39 = vld [vmem:[%s3111_s22 + $0x98] sm:$0xff]  ;;  %v2017_v42 = vld [vmem:[%s3111_s22 + $0xa0] sm:$0x3f] }
  0x17   : > { %v753_v47 = vld [vmem:[%s3088_s3] sm:$0xff]  ;;  %v754_v53 = vld [vmem:[%s3088_s3 + $0x8] sm:$0xff]  ;;  %v755_v59 = vld [vmem:[%s3088_s3 + $0x10] sm:$0xff] }
  0x18   : > { %v767_v50 = vld [vmem:[%s3089_s4] sm:$0xff]  ;;  %v768_v55 = vld [vmem:[%s3089_s4 + $0x8] sm:$0xff]  ;;  %v769_v61 = vld [vmem:[%s3089_s4 + $0x10] sm:$0xff] }
  0x19   : > { %v756_v1 = vld [vmem:[%s3088_s3 + $0x18] sm:$0xff] }
  0x1a   : > { %v770_v3 = vld [vmem:[%s3089_s4 + $0x18] sm:$0xff] }
  0x1b   : > { %1967 = vmatmul.msk.f32.gmra.mxu2 %vm622_vm0, %v2361_v6 }
  0x1c   : > { %1950 = vmatmul.msk.f32.gmra.mxu0 %vm622_vm0, %v2361_v6  ;;  %1954 = vmatmul.msk.f32.gmra.mxu1 %vm622_vm0, %v2364_v7 }
  0x1d   : > { %1971 = vmatmul.msk.f32.gmra.mxu3 %vm622_vm0, %v2364_v7 }
  0x23   : > { %1968 = vmatmul.msk.f32.gmra.mxu2 %vm622_vm0, %v2371_v8 }
  0x24   : > { %1951 = vmatmul.msk.f32.gmra.mxu0 %vm622_vm0, %v2371_v8  ;;  %1955 = vmatmul.msk.f32.gmra.mxu1 %vm622_vm0, %v2374_v9 }
  0x25   : > { %1972 = vmatmul.msk.f32.gmra.mxu3 %vm622_vm0, %v2374_v9 }
  0x2b   : > { %1969 = vmatmul.msk.f32.gmra.mxu2 %vm622_vm0, %v2381_v10 }
  0x2c   : > { %1952 = vmatmul.msk.f32.gmra.mxu0 %vm622_vm0, %v2381_v10 }
  0x34   : > { %2004 = vmatmul.msk.f32.vlgmr.msrb.gmra.mxu0 %vm622_vm0, %v2351_v4 }
  0x3c   : > { %2005 = vmatmul.msk.f32.gmra.mxu0 %vm622_vm0, %v2361_v6 }
  0x44   : > { %2006 = vmatmul.msk.f32.gmra.mxu0 %vm622_vm0, %v2371_v8 }
  0x4c   : > { %2007 = vmatmul.msk.f32.gmra.mxu0 %vm622_vm0, %v2381_v10 }
  0x54   : > { %2008 = vmatmul.msk.f32.gmra.mxu0 %vm622_vm0, %v2354_v5 }
  0x5c   : > { %2009 = vmatmul.msk.f32.gmra.mxu0 %vm622_vm0, %v2364_v7 }
  0x64   : > { %2010 = vmatmul.msk.f32.gmra.mxu0 %vm622_vm0, %v2374_v9 }
  0x91   : > { %v661_v13 = vpop.f32.mrf.mxu0  ;;  %v673_v14 = vpop.f32.mrf.mxu1 }
  0x96   : > { %v808_v40 = vpop.f32.mrf.mxu2 }
  0x98   : > { %v820_v41 = vpop.f32.mrf.mxu3 }
  0x99   : > { %v664_v15 = vpop.f32.mrf.mxu0  ;;  %v676_v16 = vpop.f32.mrf.mxu1 }
  0x9e   : > { %v811_v43 = vpop.f32.mrf.mxu2 }
  0xa0   : > { %v823_v44 = vpop.f32.mrf.mxu3 }
  0xa1   : > { %v667_v17 = vpop.f32.mrf.mxu0  ;;  %v679_v18 = vpop.f32.mrf.mxu1 }
  0xa2   : > { %1956 = vmatpush.msk.msrb.mxu1 %vm711_vm1, %v679_v18 }
  0xa4   : > { %725 = vmatpush.msrb.mxu1 %v676_v16  ;;  %v771_v16 = vld [vmem:[%s3089_s4 + $0x20] sm:$0xff] }
  0xa6   : > { %726 = vmatpush.msrb.mxu1 %v673_v14  ;;  %v814_v45 = vpop.f32.mrf.mxu2  ;;  %v757_v14 = vld [vmem:[%s3088_s3 + $0x20] sm:$0xff] }
  0xa8   : > { %v826_v46 = vpop.f32.mrf.mxu3 }
  0xa9   : > { %v670_v19 = vpop.f32.mrf.mxu0  ;;  %1980 = vmatpush.msk.msrb.mxu3 %vm711_vm1, %v826_v46  ;;  %v2028_v46 = vld [vmem:[%s3088_s3 + $0x80] sm:$0xff] }
  0xaa   : > { %727 = vmatpush.msrb.mxu1 %v670_v19 }
  0xab   : > { %871 = vmatpush.msrb.mxu3 %v823_v44 }
  0xac   : > { %728 = vmatpush.msrb.mxu1 %v667_v17 }
  0xad   : > { %872 = vmatpush.msrb.mxu3 %v820_v41  ;;  %v2034_v41 = vld [vmem:[%s3089_s4 + $0x78] sm:$0xff] }
  0xae   : > { %729 = vmatpush.msrb.mxu1 %v664_v15  ;;  %v817_v48 = vpop.f32.mrf.mxu2 }
  0xaf   : > { %873 = vmatpush.msrb.mxu3 %v817_v48  ;;  %v2035_v48 = vld [vmem:[%s3089_s4 + $0x80] sm:$0xff] }
  0xb0   : > { %730 = vmatpush.msrb.mxu1 %v661_v13 }
  0xb1   : > { %1957 = vmatmul.msk.f32.vlgmr.msrb.gmra.mxu1 %vm689_vm2, %v682_v20  ;;  %v956_v21 = vpop.f32.mrf.mxu0  ;;  %874 = vmatpush.msrb.mxu3 %v814_v45  ;;  %v758_v20 = vld [vmem:[%s3088_s3 + $0x28] sm:$0xff] }
  0xb3   : > { %875 = vmatpush.msrb.mxu3 %v811_v43  ;;  %v1107_v43 = vld [vmem:[%s3090_s5 + $0x8] sm:$0xff] }
  0xb5   : > { %876 = vmatpush.msrb.mxu3 %v808_v40 }
  0xb9   : > { %1958 = vmatmul.msk.f32.gmra.mxu1 %vm689_vm2, %v683_v22  ;;  %v959_v23 = vpop.f32.mrf.mxu0  ;;  %v772_v22 = vld [vmem:[%s3089_s4 + $0x28] sm:$0xff] }
  0xc1   : > { %1959 = vmatmul.msk.f32.gmra.mxu1 %vm689_vm2, %v684_v24  ;;  %v962_v25 = vpop.f32.mrf.mxu0 }
  0xc9   : > { %1960 = vmatmul.msk.f32.gmra.mxu1 %vm689_vm2, %v685_v26  ;;  %v965_v27 = vpop.f32.mrf.mxu0  ;;  %v759_v26 = vld [vmem:[%s3088_s3 + $0x30] sm:$0x3f] }
  0xd1   : > { %1961 = vmatmul.msk.f32.gmra.mxu1 %vm689_vm2, %v686_v28  ;;  %v968_v29 = vpop.f32.mrf.mxu0  ;;  %v773_v28 = vld [vmem:[%s3089_s4 + $0x30] sm:$0x3f] }
  0xd9   : > { %1962 = vmatmul.msk.f32.gmra.mxu1 %vm689_vm2, %v687_v30  ;;  %v971_v31 = vpop.f32.mrf.mxu0 }
  0xe1   : > { %1963 = vmatmul.msk.f32.gmra.mxu1 %vm689_vm2, %v688_v32  ;;  %v974_v33 = vpop.f32.mrf.mxu0 }
  0xe2   : > { %2018 = vmatpush.msk.msrb.mxu2 %vm711_vm1, %v974_v33  ;;  %v2026_v33 = vld [vmem:[%s3088_s3 + $0x70] sm:$0xff] }
  0xe4   : > { %1019 = vmatpush.msrb.mxu2 %v971_v31 }
  0xe6   : > { %1020 = vmatpush.msrb.mxu2 %v968_v29 }
  0xe8   : > { %1021 = vmatpush.msrb.mxu2 %v965_v27 }
  0xea   : > { %1022 = vmatpush.msrb.mxu2 %v962_v25 }
  0xec   : > { %1023 = vmatpush.msrb.mxu2 %v959_v23 }
  0xee   : > { %1024 = vmatpush.msrb.mxu2 %v956_v21 }
  0xef   : > { %2019 = vmatmul.msk.f32.vlgmr.msrb.gmra.mxu2 %vm689_vm2, %v2011_v34 }
  0xf7   : > { %2020 = vmatmul.msk.f32.gmra.mxu2 %vm689_vm2, %v2012_v35  ;;  %v2033_v35 = vld [vmem:[%s3089_s4 + $0x70] sm:$0xff] }
  0xff   : > { %2021 = vmatmul.msk.f32.gmra.mxu2 %vm689_vm2, %v2013_v36 }
 0x107   : > { %2022 = vmatmul.msk.f32.gmra.mxu2 %vm689_vm2, %v2014_v37  ;;  %v1106_v37 = vld [vmem:[%s3090_s5] sm:$0xff] }
 0x10f   : > { %2023 = vmatmul.msk.f32.gmra.mxu2 %vm689_vm2, %v2015_v38 }
 0x117   : > { %2024 = vmatmul.msk.f32.gmra.mxu2 %vm689_vm2, %v2016_v39  ;;  %v2027_v39 = vld [vmem:[%s3088_s3 + $0x78] sm:$0xff] }
 0x11f   : > { %2025 = vmatmul.msk.f32.gmra.mxu2 %vm689_vm2, %v2017_v42 }
 0x12e   : > { %v732_v49 = vpop.f32.mrf.mxu1 }
 0x12f   : > { %v760_v51 = vmul.f32 %v753_v47, %v732_v49 }
 0x131   : > { %v774_v52 = vadd.f32 %v767_v50, %v760_v51  ;;  %v1108_v50 = vld [vmem:[%s3090_s5 + $0x10] sm:$0xff] }
 0x133   : > { %2142 = vtanh.f32 %v774_v52 }
 0x136   : > { %v735_v54 = vpop.f32.mrf.mxu1 }
 0x137   : > { %v761_v56 = vmul.f32 %v754_v53, %v735_v54  ;;  %v2029_v53 = vld [vmem:[%s3088_s3 + $0x88] sm:$0xff] }
 0x139   : > { %v2496_v57 = vpop.eup %2142  ;;  %v775_v58 = vadd.f32 %v768_v55, %v761_v56  ;;  %v2036_v55 = vld [vmem:[%s3089_s4 + $0x88] sm:$0xff] }
 0x13a   : > { %1084 = vst.msk [vmem:[%s2494_s19] sm:$0xff] %vm622_vm0, %v2496_v57 }
 0x13b   : > { %2144 = vtanh.f32 %v775_v58  ;;  %v1109_v58 = vld [vmem:[%s3090_s5 + $0x18] sm:$0xff] }
 0x13e   : > { %v738_v60 = vpop.f32.mrf.mxu1 }
 0x13f   : > { %v762_v62 = vmul.f32 %v755_v59, %v738_v60 }
 0x141   : > { %v2507_v63 = vpop.eup %2144  ;;  %v776_v0 = vadd.f32 %v769_v61, %v762_v62  ;;  %v2030_v61 = vld [vmem:[%s3088_s3 + $0x90] sm:$0xff] }
 0x142   : > { %1085 = vst.msk [vmem:[%s2494_s19 + $0x8] sm:$0xff] %vm622_vm0, %v2507_v63 }
 0x143   : > { %2146 = vtanh.f32 %v776_v0  ;;  %v2037_v0 = vld [vmem:[%s3089_s4 + $0x90] sm:$0xff] }
 0x146   : > { %v741_v2 = vpop.f32.mrf.mxu1 }
 0x147   : > { %v763_v11 = vmul.f32 %v756_v1, %v741_v2  ;;  %v1110_v2 = vld [vmem:[%s3090_s5 + $0x20] sm:$0xff] }
 0x149   : > { %v2518_v12 = vpop.eup %2146  ;;  %v777_v13 = vadd.f32 %v770_v3, %v763_v11 }
 0x14a   : > { %1086 = vst.msk [vmem:[%s2494_s19 + $0x10] sm:$0xff] %vm622_vm0, %v2518_v12 }
 0x14b   : > { %2148 = vtanh.f32 %v777_v13  ;;  %v2031_v13 = vld [vmem:[%s3088_s3 + $0x98] sm:$0xff] }
 0x14e   : > { %v744_v15 = vpop.f32.mrf.mxu1 }
 0x14f   : > { %v764_v17 = vmul.f32 %v757_v14, %v744_v15  ;;  %v2038_v15 = vld [vmem:[%s3089_s4 + $0x98] sm:$0xff] }
 0x151   : > { %v2529_v18 = vpop.eup %2148  ;;  %v778_v19 = vadd.f32 %v771_v16, %v764_v17  ;;  %v1973_v17 = vld [vmem:[%s3111_s22 + $0x38] sm:$0xff] }
 0x152   : > { %1087 = vst.msk [vmem:[%s2494_s19 + $0x18] sm:$0xff] %vm622_vm0, %v2529_v18  ;;  %1981 = vmatmul.msk.f32.vlgmr.msrb.gmra.mxu3 %vm689_vm2, %v1973_v17 }
 0x153   : > { %2150 = vtanh.f32 %v778_v19  ;;  %v1111_v19 = vld [vmem:[%s3090_s5 + $0x28] sm:$0xff] }
 0x156   : > { %v747_v21 = vpop.f32.mrf.mxu1 }
 0x157   : > { %v765_v23 = vmul.f32 %v758_v20, %v747_v21 }
 0x159   : > { %v2540_v24 = vpop.eup %2150  ;;  %v779_v25 = vadd.f32 %v772_v22, %v765_v23  ;;  %v2032_v22 = vld [vmem:[%s3088_s3 + $0xa0] sm:$0x3f] }
 0x15a   : > { %1088 = vst.msk [vmem:[%s2494_s19 + $0x20] sm:$0xff] %vm622_vm0, %v2540_v24 }
 0x15b   : > { %2152 = vtanh.f32 %v779_v25  ;;  %v2039_v25 = vld [vmem:[%s3089_s4 + $0xa0] sm:$0x3f] }
 0x15e   : > { %v750_v27 = vpop.f32.mrf.mxu1 }
 0x15f   : > { %v766_v29 = vmul.f32 %v759_v26, %v750_v27  ;;  %v1974_v27 = vld [vmem:[%s3111_s22 + $0x40] sm:$0xff] }
 0x160   : > { %1982 = vmatmul.msk.f32.gmra.mxu3 %vm689_vm2, %v1974_v27 }
 0x161   : > { %v2551_v30 = vpop.eup %2152  ;;  %v780_v31 = vadd.f32 %v773_v28, %v766_v29  ;;  %v1112_v28 = vld [vmem:[%s3090_s5 + $0x30] sm:$0x3f] }
 0x162   : > { %1089 = vst.msk [vmem:[%s2494_s19 + $0x28] sm:$0xff] %vm622_vm0, %v2551_v30 }
 0x163   : > { %2154 = vtanh.f32 %v780_v31 }
 0x169   : > { %v2556_v32 = vpop.eup %2154 }
 0x16a   : > { %2040 = vmatpush.msk.msra.mxu1 %vm711_vm1, %v2556_v32  ;;  %1091 = vst.msk [vmem:[%s2494_s19 + $0x30] sm:$0x3f] %vm1090_vm3, %v2556_v32 }
 0x16c   : > { %1147 = vmatpush.msra.mxu1 %v2551_v30 }
 0x16e   : > { %1148 = vmatpush.msra.mxu1 %v2540_v24 }
 0x170   : > { %1149 = vmatpush.msra.mxu1 %v2529_v18 }
 0x172   : > { %v1026_v34 = vpop.f32.mrf.mxu2  ;;  %1150 = vmatpush.msra.mxu1 %v2518_v12 }
 0x173   : > { %v1055_v36 = vmul.f32 %v2026_v33, %v1026_v34  ;;  %v1975_v33 = vld [vmem:[%s3111_s22 + $0x48] sm:$0xff] }
 0x174   : > { %1151 = vmatpush.msra.mxu1 %v2507_v63  ;;  %1983 = vmatmul.msk.f32.gmra.mxu3 %vm689_vm2, %v1975_v33 }
 0x175   : > { %v1070_v38 = vadd.f32 %v2033_v35, %v1055_v36  ;;  %v1976_v35 = vld [vmem:[%s3111_s22 + $0x50] sm:$0xff]  ;;  %v2055_v36 = vld [vmem:[%s3090_s5 + $0x38] sm:$0xff] }
 0x176   : > { %1152 = vmatpush.msra.mxu1 %v2496_v57 }
 0x177   : > { %2156 = vtanh.f32 %v1070_v38  ;;  %2041 = vmatmul.msk.f32.vlgmr.msra.gmra.mxu1 %vm689_vm2, %v1106_v37  ;;  %v1977_v37 = vld [vmem:[%s3111_s22 + $0x58] sm:$0xff]  ;;  %v2056_v38 = vld [vmem:[%s3090_s5 + $0x40] sm:$0xff] }
 0x17a   : > { %v1029_v40 = vpop.f32.mrf.mxu2 }
 0x17b   : > { %v1056_v42 = vmul.f32 %v2027_v39, %v1029_v40  ;;  %v1978_v39 = vld [vmem:[%s3111_s22 + $0x60] sm:$0xff]  ;;  %v2057_v40 = vld [vmem:[%s3090_s5 + $0x48] sm:$0xff] }
 0x17c   : > { %1984 = vmatmul.msk.f32.gmra.mxu3 %vm689_vm2, %v1976_v35  ;;  %v1482_v35 = vld [vmem:[%s3094_s9] sm:$0xff] }
 0x17d   : > { %v2591_v44 = vpop.eup %2156  ;;  %v1071_v45 = vadd.f32 %v2034_v41, %v1056_v42  ;;  %v1979_v41 = vld [vmem:[%s3111_s22 + $0x68] sm:$0x3f]  ;;  %v2058_v42 = vld [vmem:[%s3090_s5 + $0x50] sm:$0xff] }
 0x17e   : > { %1099 = vst.msk [vmem:[%s2586_s25] sm:$0xff] %vm622_vm0, %v2591_v44 }
 0x17f   : > { %2158 = vtanh.f32 %v1071_v45  ;;  %2042 = vmatmul.msk.f32.gmra.mxu1 %vm689_vm2, %v1107_v43  ;;  %v1197_v43 = vld [vmem:[%s3091_s6 + $0x8] sm:$0xff]  ;;  %v1196_v45 = vld [vmem:[%s3091_s6] sm:$0xff] }
 0x180   : > { %1233 = vmatpush.msra.mxu3 %v1197_v43 }
 0x182   : > { %v1032_v47 = vpop.f32.mrf.mxu2  ;;  %1234 = vmatpush.msra.mxu3 %v1196_v45 }
 0x183   : > { %v1057_v49 = vmul.f32 %v2028_v46, %v1032_v47  ;;  %v2059_v46 = vld [vmem:[%s3090_s5 + $0x58] sm:$0xff]  ;;  %v2060_v47 = vld [vmem:[%s3090_s5 + $0x60] sm:$0xff] }
 0x184   : > { %1985 = vmatmul.msk.f32.gmra.mxu3 %vm689_vm2, %v1977_v37  ;;  %v1989_v37 = vld [vmem:[%s3088_s3 + $0x40] sm:$0xff] }
 0x185   : > { %v2606_v51 = vpop.eup %2158  ;;  %v1072_v52 = vadd.f32 %v2035_v48, %v1057_v49  ;;  %v2061_v48 = vld [vmem:[%s3090_s5 + $0x68] sm:$0x3f] }
 0x186   : > { %1100 = vst.msk [vmem:[%s2586_s25 + $0x8] sm:$0xff] %vm622_vm0, %v2606_v51 }
 0x187   : > { %2160 = vtanh.f32 %v1072_v52  ;;  %2043 = vmatmul.msk.f32.gmra.mxu1 %vm689_vm2, %v1108_v50  ;;  %v1182_v52 = vmul.f32 0.2, %v2496_v57  ;;  %v2071_v57 = vld [vmem:[%s3091_s6 + $0x18] sm:$0xff] }
 0x188   : > { %1421 = vmatpush.msra.mxu2 %v2071_v57 }
 0x18a   : > { %v1035_v54 = vpop.f32.mrf.mxu2 }
 0x18b   : > { %v1058_v56 = vmul.f32 %v2029_v53, %v1035_v54 }
 0x18c   : > { %1986 = vmatmul.msk.f32.gmra.mxu3 %vm689_vm2, %v1978_v39 }
 0x18d   : > { %v2621_v59 = vpop.eup %2160  ;;  %v1073_v60 = vadd.f32 %v2036_v55, %v1058_v56  ;;  %v1183_v56 = vmul.f32 0.2, %v2507_v63 }
 0x18e   : > { %1101 = vst.msk [vmem:[%s2586_s25 + $0x10] sm:$0xff] %vm622_vm0, %v2621_v59 }
 0x18f   : > { %2162 = vtanh.f32 %v1073_v60  ;;  %2044 = vmatmul.msk.f32.gmra.mxu1 %vm689_vm2, %v1109_v58 }
 0x192   : > { %v1038_v62 = vpop.f32.mrf.mxu2 }
 0x193   : > { %v1059_v1 = vmul.f32 %v2030_v61, %v1038_v62  ;;  %v1184_v62 = vmul.f32 0.2, %v2518_v12 }
 0x194   : > { %1987 = vmatmul.msk.f32.gmra.mxu3 %vm689_vm2, %v1979_v41  ;;  %v1990_v41 = vld [vmem:[%s3088_s3 + $0x48] sm:$0xff] }
 0x195   : > { %v2639_v3 = vpop.eup %2162  ;;  %v1074_v11 = vadd.f32 %v2037_v0, %v1059_v1 }
 0x196   : > { %1102 = vst.msk [vmem:[%s2586_s25 + $0x18] sm:$0xff] %vm622_vm0, %v2639_v3 }
 0x197   : > { %2164 = vtanh.f32 %v1074_v11  ;;  %2045 = vmatmul.msk.f32.gmra.mxu1 %vm689_vm2, %v1110_v2  ;;  %v1185_v11 = vmul.f32 0.2, %v2529_v18  ;;  %v1483_v18 = vld [vmem:[%s3094_s9 + $0x8] sm:$0xff] }
 0x198   : > { %1498 = vmatpush.msrb.mxu1 %v1483_v18 }
 0x19a   : > { %v1041_v14 = vpop.f32.mrf.mxu2  ;;  %1499 = vmatpush.msrb.mxu1 %v1482_v35 }
 0x19b   : > { %v1060_v16 = vmul.f32 %v2031_v13, %v1041_v14 }
 0x19d   : > { %v2658_v20 = vpop.eup %2164  ;;  %v1075_v21 = vadd.f32 %v2038_v15, %v1060_v16  ;;  %v1186_v15 = vmul.f32 0.2, %v2540_v24  ;;  %v2070_v16 = vld [vmem:[%s3091_s6 + $0x10] sm:$0xff] }
 0x19e   : > { %1103 = vst.msk [vmem:[%s2586_s25 + $0x20] sm:$0xff] %vm622_vm0, %v2658_v20  ;;  %1422 = vmatpush.msra.mxu2 %v2070_v16 }
 0x19f   : > { %2166 = vtanh.f32 %v1075_v21  ;;  %2046 = vmatmul.msk.f32.gmra.mxu1 %vm689_vm2, %v1111_v19  ;;  %v1187_v21 = vmul.f32 0.2, %v2551_v30 }
 0x1a2   : > { %v1044_v23 = vpop.f32.mrf.mxu2 }
 0x1a3   : > { %v1061_v26 = vmul.f32 %v2032_v22, %v1044_v23  ;;  %v1988_v23 = vld [vmem:[%s3088_s3 + $0x38] sm:$0xff] }
 0x1a5   : > { %v2677_v29 = vpop.eup %2166  ;;  %v1076_v31 = vadd.f32 %v2039_v25, %v1061_v26  ;;  %v1995_v25 = vld [vmem:[%s3089_s4 + $0x38] sm:$0xff] }
 0x1a6   : > { %1104 = vst.msk [vmem:[%s2586_s25 + $0x28] sm:$0xff] %vm622_vm0, %v2677_v29  ;;  %v1374_v35 = vmul.f32 0.2, %v2677_v29 }
 0x1a7   : > { %2168 = vtanh.f32 %v1076_v31  ;;  %2047 = vmatmul.msk.f32.gmra.mxu1 %vm689_vm2, %v1112_v28  ;;  %v1188_v28 = vmul.f32 0.2, %v2556_v32  ;;  %v1996_v32 = vld [vmem:[%s3089_s4 + $0x40] sm:$0xff] }
 0x1ad   : > { %v2687_v34 = vpop.eup %2168 }
 0x1ae   : > { %2062 = vmatpush.msk.msra.mxu0 %vm711_vm1, %v2687_v34  ;;  %1105 = vst.msk [vmem:[%s2586_s25 + $0x30] sm:$0x3f] %vm1090_vm3, %v2687_v34  ;;  %s2794_s25 = scalar_lea.vmem %s3102_s17, %s2342_s23 }
 0x1af   : > { %2093 = vmatmul.msk.f32.vlgmr.msrb.gmra.mxu1 %vm622_vm0, %v2351_v4 }
 0x1b0   : > { %1334 = vmatpush.msra.mxu0 %v2677_v29  ;;  %v1257_v29 = vld [vmem:[%s3092_s7] sm:$0xff] }
 0x1b2   : > { %1335 = vmatpush.msra.mxu0 %v2658_v20 }
 0x1b4   : > { %1336 = vmatpush.msra.mxu0 %v2639_v3 }
 0x1b6   : > { %1337 = vmatpush.msra.mxu0 %v2621_v59 }
 0x1b7   : > { %2094 = vmatmul.msk.f32.gmra.mxu1 %vm622_vm0, %v2361_v6  ;;  %v1369_v6 = vmul.f32 0.2, %v2591_v44 }
 0x1b8   : > { %1338 = vmatpush.msra.mxu0 %v2606_v51 }
 0x1ba   : > { %1339 = vmatpush.msra.mxu0 %v2591_v44 }
 0x1bb   : > { %2063 = vmatmul.msk.f32.vlgmr.msra.gmra.mxu0 %vm689_vm2, %v2055_v36 }
 0x1bf   : > { %2095 = vmatmul.msk.f32.gmra.mxu1 %vm622_vm0, %v2371_v8 }
 0x1c3   : > { %2064 = vmatmul.msk.f32.gmra.mxu0 %vm689_vm2, %v2056_v38 }
 0x1c7   : > { %2096 = vmatmul.msk.f32.gmra.mxu1 %vm622_vm0, %v2381_v10 }
 0x1cb   : > { %2065 = vmatmul.msk.f32.gmra.mxu0 %vm689_vm2, %v2057_v40 }
 0x1cf   : > { %2097 = vmatmul.msk.f32.gmra.mxu1 %vm622_vm0, %v2354_v5 }
 0x1d3   : > { %2066 = vmatmul.msk.f32.gmra.mxu0 %vm689_vm2, %v2058_v42  ;;  %v1997_v42 = vld [vmem:[%s3089_s4 + $0x48] sm:$0xff] }
 0x1d5   : > { %v878_v24 = vpop.f32.mrf.mxu3 }
 0x1d6   : > { %v907_v30 = vmul.f32 %v1988_v23, %v878_v24  ;;  %v2001_v24 = vld [vmem:[%s3089_s4 + $0x68] sm:$0x3f] }
 0x1d7   : > { %2098 = vmatmul.msk.f32.gmra.mxu1 %vm622_vm0, %v2364_v7 }
 0x1d8   : > { %v922_v31 = vadd.f32 %v1995_v25, %v907_v30 }
 0x1da   : > { %2170 = vtanh.f32 %v922_v31 }
 0x1db   : > { %2067 = vmatmul.msk.f32.gmra.mxu0 %vm689_vm2, %v2059_v46 }
 0x1df   : > { %2099 = vmatmul.msk.f32.gmra.mxu1 %vm622_vm0, %v2374_v9  ;;  %v1551_v9 = vld [vmem:[%s3097_s12] sm:$0xff] }
 0x1e0   : > { %v2171_v39 = vpop.eup %2170 }
 0x1e1   : > { %1092 = vst.msk [vmem:[%s2794_s25] sm:$0xff] %vm622_vm0, %v2171_v39 }
 0x1e3   : > { %2068 = vmatmul.msk.f32.gmra.mxu0 %vm689_vm2, %v2060_v47  ;;  %v881_v36 = vpop.f32.mrf.mxu3 }
 0x1e4   : > { %v908_v38 = vmul.f32 %v1989_v37, %v881_v36  ;;  %v1552_v37 = vld [vmem:[%s3097_s12 + $0x8] sm:$0xff] }
 0x1e5   : > { %1650 = vmatpush.msrb.mxu0 %v1552_v37 }
 0x1e6   : > { %v923_v40 = vadd.f32 %v1996_v32, %v908_v38  ;;  %v1375_v38 = vmul.f32 0.2, %v2687_v34 }
 0x1e7   : > { %1651 = vmatpush.msrb.mxu0 %v1551_v9 }
 0x1e8   : > { %2172 = vtanh.f32 %v923_v40 }
 0x1eb   : > { %2069 = vmatmul.msk.f32.gmra.mxu0 %vm689_vm2, %v2061_v48 }
 0x1ee   : > { %v2173_v45 = vpop.eup %2172 }
 0x1ef   : > { %1093 = vst.msk [vmem:[%s2794_s25 + $0x8] sm:$0xff] %vm622_vm0, %v2173_v45  ;;  %v1272_v45 = vld [vmem:[%s3093_s8 + $0x8] sm:$0xff] }
 0x1f4   : > { %v1154_v49 = vpop.f32.mrf.mxu1 }
 0x1f5   : > { %v1175_v50 = vmul.f32 0.8, %v1154_v49 }
 0x1f7   : > { %v1189_v53 = vadd.f32 %v1182_v52, %v1175_v50  ;;  %v884_v4 = vpop.f32.mrf.mxu3  ;;  %v1991_v52 = vld [vmem:[%s3088_s3 + $0x50] sm:$0xff] }
 0x1f8   : > { %v909_v43 = vmul.f32 %v1990_v41, %v884_v4  ;;  %v1271_v4 = vld [vmem:[%s3093_s8] sm:$0xff] }
 0x1f9   : > { %2048 = vmatmul.msk.f32.vlgmr.msra.gmra.mxu3 %vm622_vm0, %v1189_v53  ;;  %v1998_v53 = vld [vmem:[%s3089_s4 + $0x50] sm:$0xff] }
 0x1fa   : > { %v924_v46 = vadd.f32 %v1997_v42, %v909_v43  ;;  %v1258_v43 = vld [vmem:[%s3092_s7 + $0x8] sm:$0xff] }
 0x1fc   : > { %v1157_v54 = vpop.f32.mrf.mxu1  ;;  %2174 = vtanh.f32 %v924_v46 }
 0x1fd   : > { %v1176_v55 = vmul.f32 0.8, %v1157_v54 }
 0x1ff   : > { %v1190_v58 = vadd.f32 %v1183_v56, %v1176_v55  ;;  %v887_v50 = vpop.f32.mrf.mxu3 }
 0x200   : > { %v910_v54 = vmul.f32 %v1991_v52, %v887_v50  ;;  %v1273_v50 = vld [vmem:[%s3093_s8 + $0x10] sm:$0xff] }
 0x201   : > { %2049 = vmatmul.msk.f32.gmra.mxu3 %vm622_vm0, %v1190_v58  ;;  %v1370_v58 = vmul.f32 0.2, %v2606_v51 }
 0x202   : > { %v2175_v55 = vpop.eup %2174  ;;  %v925_v56 = vadd.f32 %v1998_v53, %v910_v54 }
 0x203   : > { %1094 = vst.msk [vmem:[%s2794_s25 + $0x10] sm:$0xff] %vm622_vm0, %v2175_v55  ;;  %v1260_v55 = vld [vmem:[%s3092_s7 + $0x18] sm:$0xff] }
 0x204   : > { %v1160_v60 = vpop.f32.mrf.mxu1  ;;  %2176 = vtanh.f32 %v925_v56 }
 0x205   : > { %v1177_v61 = vmul.f32 0.8, %v1160_v60 }
 0x207   : > { %v1191_v0 = vadd.f32 %v1184_v62, %v1177_v61  ;;  %v890_v61 = vpop.f32.mrf.mxu3  ;;  %v1992_v62 = vld [vmem:[%s3088_s3 + $0x58] sm:$0xff] }
 0x208   : > { %v911_v57 = vmul.f32 %v1992_v62, %v890_v61  ;;  %v2101_v61 = vld [vmem:[%s3097_s12 + $0x18] sm:$0xff]  ;;  %v1261_v62 = vld [vmem:[%s3092_s7 + $0x20] sm:$0xff] }
 0x209   : > { %2050 = vmatmul.msk.f32.gmra.mxu3 %vm622_vm0, %v1191_v0  ;;  %v1999_v0 = vld [vmem:[%s3089_s4 + $0x58] sm:$0xff] }
 0x20a   : > { %1591 = vmatpush.msrb.mxu3 %v2101_v61 }
 0x20c   : > { %v1163_v1 = vpop.f32.mrf.mxu1 }
 0x20d   : > { %v1178_v2 = vmul.f32 0.8, %v1163_v1  ;;  %v2177_v1 = vpop.eup %2176 }
 0x20e   : > { %1095 = vst.msk [vmem:[%s2794_s25 + $0x18] sm:$0xff] %vm622_vm0, %v2177_v1 }
 0x20f   : > { %v1192_v63 = vadd.f32 %v1185_v11, %v1178_v2  ;;  %v926_v2 = vadd.f32 %v1999_v0, %v911_v57  ;;  %v1371_v11 = vmul.f32 0.2, %v2621_v59  ;;  %v1275_v57 = vld [vmem:[%s3093_s8 + $0x20] sm:$0xff] }
 0x211   : > { %2051 = vmatmul.msk.f32.gmra.mxu3 %vm622_vm0, %v1192_v63  ;;  %2178 = vtanh.f32 %v926_v2 }
 0x214   : > { %v1166_v13 = vpop.f32.mrf.mxu1 }
 0x215   : > { %v1179_v14 = vmul.f32 0.8, %v1166_v13  ;;  %v893_v13 = vpop.f32.mrf.mxu3 }
 0x217   : > { %v1193_v12 = vadd.f32 %v1186_v15, %v1179_v14  ;;  %v1993_v14 = vld [vmem:[%s3088_s3 + $0x60] sm:$0xff]  ;;  %v2179_v16 = vpop.eup %2178 }
 0x218   : > { %v2000_v15 = vld [vmem:[%s3089_s4 + $0x60] sm:$0xff]  ;;  %1096 = vst.msk [vmem:[%s2794_s25 + $0x20] sm:$0xff] %vm622_vm0, %v2179_v16 }
 0x219   : > { %2052 = vmatmul.msk.f32.gmra.mxu3 %vm622_vm0, %v1193_v12  ;;  %v912_v12 = vmul.f32 %v1993_v14, %v893_v13  ;;  %v2117_v14 = vld [vmem:[%s3097_s12 + $0x28] sm:$0xff] }
 0x21a   : > { %1712 = vmatpush.msrb.mxu2 %v2117_v14 }
 0x21c   : > { %v1169_v17 = vpop.f32.mrf.mxu1 }
 0x21d   : > { %v1180_v19 = vmul.f32 0.8, %v1169_v17  ;;  %v927_v17 = vadd.f32 %v2000_v15, %v912_v12  ;;  %v2921_v15 = vld [vmem:[%s3095_s10] ss:$0 sm:$0xff] }
 0x21e   : > { %v2926_v12 = vld [vmem:[%s3096_s11] ss:$0 sm:$0xff] }
 0x21f   : > { %v1194_v22 = vadd.f32 %v1187_v21, %v1180_v19  ;;  %2180 = vtanh.f32 %v927_v17  ;;  %v1372_v19 = vmul.f32 0.2, %v2639_v3  ;;  %v1994_v21 = vld [vmem:[%s3088_s3 + $0x68] sm:$0x3f] }
 0x221   : > { %2053 = vmatmul.msk.f32.gmra.mxu3 %vm622_vm0, %v1194_v22  ;;  %v896_v22 = vpop.f32.mrf.mxu3 }
 0x222   : > { %v913_v23 = vmul.f32 %v1994_v21, %v896_v22 }
 0x224   : > { %v1172_v26 = vpop.f32.mrf.mxu1 }
 0x225   : > { %v1181_v27 = vmul.f32 0.8, %v1172_v26  ;;  %v2181_v25 = vpop.eup %2180  ;;  %v928_v26 = vadd.f32 %v2001_v24, %v913_v23  ;;  %v1277_v24 = vld [vmem:[%s3093_s8 + $0x30] sm:$0x3f] }
 0x226   : > { %1097 = vst.msk [vmem:[%s2794_s25 + $0x28] sm:$0xff] %vm622_vm0, %v2181_v25  ;;  %v2116_v25 = vld [vmem:[%s3097_s12 + $0x20] sm:$0xff] }
 0x227   : > { %v1195_v33 = vadd.f32 %v1188_v28, %v1181_v27  ;;  %2182 = vtanh.f32 %v928_v26  ;;  %v1373_v27 = vmul.f32 0.2, %v2658_v20  ;;  %1713 = vmatpush.msrb.mxu2 %v2116_v25  ;;  %v2085_v25 = vld [vmem:[%s3092_s7 + $0x68] sm:$0x3f] }
 0x229   : > { %2054 = vmatmul.msk.f32.gmra.mxu3 %vm622_vm0, %v1195_v33 }
 0x22d   : > { %v2183_v28 = vpop.eup %2182 }
 0x22e   : > { %1098 = vst.msk [vmem:[%s2794_s25 + $0x30] sm:$0x3f] %vm1090_vm3, %v2183_v28 }
 0x238   : > { %v1341_v47 = vpop.f32.mrf.mxu0 }
 0x239   : > { %v1362_v48 = vmul.f32 0.8, %v1341_v47 }
 0x23b   : > { %v1376_v49 = vadd.f32 %v1369_v6, %v1362_v48  ;;  %v1259_v6 = vld [vmem:[%s3092_s7 + $0x10] sm:$0xff] }
 0x23d   : > { %2072 = vmatmul.msk.f32.vlgmr.msra.gmra.mxu2 %vm622_vm0, %v1376_v49 }
 0x240   : > { %v1344_v44 = vpop.f32.mrf.mxu0 }
 0x241   : > { %v1363_v8 = vmul.f32 0.8, %v1344_v44  ;;  %v1274_v44 = vld [vmem:[%s3093_s8 + $0x18] sm:$0xff] }
 0x243   : > { %v1377_v60 = vadd.f32 %v1370_v58, %v1363_v8 }
 0x245   : > { %2073 = vmatmul.msk.f32.gmra.mxu2 %vm622_vm0, %v1377_v60 }
 0x248   : > { %v1347_v51 = vpop.f32.mrf.mxu0 }
 0x249   : > { %v1364_v10 = vmul.f32 0.8, %v1347_v51 }
 0x24b   : > { %v1378_v63 = vadd.f32 %v1371_v11, %v1364_v10  ;;  %v1262_v10 = vld [vmem:[%s3092_s7 + $0x28] sm:$0xff] }
 0x24d   : > { %2074 = vmatmul.msk.f32.gmra.mxu2 %vm622_vm0, %v1378_v63  ;;  %v1276_v63 = vld [vmem:[%s3093_s8 + $0x28] sm:$0xff] }
 0x250   : > { %v1350_v59 = vpop.f32.mrf.mxu0 }
 0x251   : > { %v1365_v5 = vmul.f32 0.8, %v1350_v59  ;;  %v1501_v59 = vpop.f32.mrf.mxu1 }
 0x253   : > { %v1379_v18 = vadd.f32 %v1372_v19, %v1365_v5  ;;  %v1526_v5 = vmul.f32 %v2921_v15, %v1501_v59  ;;  %v1263_v19 = vld [vmem:[%s3092_s7 + $0x30] sm:$0x3f] }
 0x255   : > { %2075 = vmatmul.msk.f32.gmra.mxu2 %vm622_vm0, %v1379_v18  ;;  %v1537_v21 = vadd.f32 %v2926_v12, %v1526_v5  ;;  %v2100_v18 = vld [vmem:[%s3097_s12 + $0x10] sm:$0xff] }
 0x256   : > { %1592 = vmatpush.msrb.mxu3 %v2100_v18  ;;  %v2091_v18 = vld [vmem:[%s3093_s8 + $0x60] sm:$0xff] }
 0x257   : > { %v1544_v23 = vmax.f32 %v1537_v21, 0.0 }
 0x258   : > { %v1353_v3 = vpop.f32.mrf.mxu0 }
 0x259   : > { %v1366_v30 = vmul.f32 0.8, %v1353_v3 }
 0x25b   : > { %v1380_v7 = vadd.f32 %v1373_v27, %v1366_v30  ;;  %v1504_v27 = vpop.f32.mrf.mxu1 }
 0x25d   : > { %2076 = vmatmul.msk.f32.gmra.mxu2 %vm622_vm0, %v1380_v7  ;;  %v1527_v7 = vmul.f32 %v2921_v15, %v1504_v27 }
 0x25f   : > { %v1538_v28 = vadd.f32 %v2926_v12, %v1527_v7 }
 0x260   : > { %v1356_v31 = vpop.f32.mrf.mxu0 }
 0x261   : > { %v1367_v33 = vmul.f32 0.8, %v1356_v31  ;;  %v1545_v31 = vmax.f32 %v1538_v28, 0.0 }
 0x263   : > { %v1381_v36 = vadd.f32 %v1374_v35, %v1367_v33  ;;  %v1507_v35 = vpop.f32.mrf.mxu1 }
 0x265   : > { %2077 = vmatmul.msk.f32.gmra.mxu2 %vm622_vm0, %v1381_v36  ;;  %v1528_v36 = vmul.f32 %v2921_v15, %v1507_v35 }
 0x267   : > { %v1539_v37 = vadd.f32 %v2926_v12, %v1528_v36 }
 0x268   : > { %v1359_v20 = vpop.f32.mrf.mxu0 }
 0x269   : > { %v1368_v32 = vmul.f32 0.8, %v1359_v20  ;;  %v1546_v9 = vmax.f32 %v1539_v37, 0.0  ;;  %v2079_v20 = vld [vmem:[%s3092_s7 + $0x38] sm:$0xff] }
 0x26b   : > { %v1382_v39 = vadd.f32 %v1375_v38, %v1368_v32  ;;  %v1510_v32 = vpop.f32.mrf.mxu1 }
 0x26d   : > { %2078 = vmatmul.msk.f32.gmra.mxu2 %vm622_vm0, %v1382_v39  ;;  %v2086_v39 = vld [vmem:[%s3093_s8 + $0x38] sm:$0xff] }
 0x275   : > { %2118 = vmatmul.msk.f32.vlgmr.msrb.gmra.mxu2 %vm622_vm0, %v1544_v23 }
 0x27c   : > { %v1236_v40 = vpop.f32.mrf.mxu3 }
 0x27d   : > { %v1264_v41 = vmul.f32 %v1257_v29, %v1236_v40  ;;  %2119 = vmatmul.msk.f32.gmra.mxu2 %vm622_vm0, %v1545_v31  ;;  %v1529_v29 = vmul.f32 %v2921_v15, %v1510_v32 }
 0x27f   : > { %v1278_v42 = vadd.f32 %v1271_v4, %v1264_v41  ;;  %v1540_v4 = vadd.f32 %v2926_v12, %v1529_v29 }
 0x281   : > { %2184 = vtanh.f32 %v1278_v42  ;;  %v1547_v42 = vmax.f32 %v1540_v4, 0.0 }
 0x284   : > { %v1239_v34 = vpop.f32.mrf.mxu3 }
 0x285   : > { %v1265_v46 = vmul.f32 %v1258_v43, %v1239_v34  ;;  %2120 = vmatmul.msk.f32.gmra.mxu2 %vm622_vm0, %v1546_v9  ;;  %v2080_v43 = vld [vmem:[%s3092_s7 + $0x40] sm:$0xff]  ;;  %v1513_v34 = vpop.f32.mrf.mxu1 }
 0x287   : > { %v2185_v47 = vpop.eup %2184  ;;  %v1279_v48 = vadd.f32 %v1272_v45, %v1265_v46  ;;  %v2087_v46 = vld [vmem:[%s3093_s8 + $0x40] sm:$0xff] }
 0x288   : > { %2109 = vmatmul.msk.f32.vlgmr.msrb.gmra.mxu0 %vm622_vm0, %v2185_v47  ;;  %v1530_v47 = vmul.f32 %v2921_v15, %v1513_v34 }
 0x289   : > { %2186 = vtanh.f32 %v1279_v48 }
 0x28c   : > { %v1242_v49 = vpop.f32.mrf.mxu3 }
 0x28d   : > { %v1266_v52 = vmul.f32 %v1259_v6, %v1242_v49  ;;  %2121 = vmatmul.msk.f32.gmra.mxu2 %vm622_vm0, %v1547_v42  ;;  %v1541_v6 = vadd.f32 %v2926_v12, %v1530_v47  ;;  %v2212_v42 = vld [vmem:[%s2348_s29] sm:$0xff]  ;;  %v1758_v47 = vld [vmem:[%s3099_s14 + $0x8] sm:$0xff] }
 0x28f   : > { %v2187_v53 = vpop.eup %2186  ;;  %v1280_v54 = vadd.f32 %v1273_v50, %v1266_v52  ;;  %v1548_v52 = vmax.f32 %v1541_v6, 0.0 }
 0x290   : > { %2110 = vmatmul.msk.f32.gmra.mxu0 %vm622_vm0, %v2187_v53  ;;  %v2081_v53 = vld [vmem:[%s3092_s7 + $0x48] sm:$0xff] }
 0x291   : > { %2188 = vtanh.f32 %v1280_v54  ;;  %v1516_v54 = vpop.f32.mrf.mxu1 }
 0x294   : > { %v1245_v56 = vpop.f32.mrf.mxu3 }
 0x295   : > { %v1267_v8 = vmul.f32 %v1260_v55, %v1245_v56  ;;  %2122 = vmatmul.msk.f32.gmra.mxu2 %vm622_vm0, %v1548_v52  ;;  %v2088_v56 = vld [vmem:[%s3093_s8 + $0x48] sm:$0xff] }
 0x296   : > { %v2213_v52 = vld [vmem:[%s2348_s29 + $0x8] sm:$0xff] }
 0x297   : > { %v2189_v58 = vpop.eup %2188  ;;  %v1281_v60 = vadd.f32 %v1274_v44, %v1267_v8  ;;  %v1531_v44 = vmul.f32 %v2921_v15, %v1516_v54 }
 0x298   : > { %2111 = vmatmul.msk.f32.gmra.mxu0 %vm622_vm0, %v2189_v58 }
 0x299   : > { %2190 = vtanh.f32 %v1281_v60  ;;  %v1542_v58 = vadd.f32 %v2926_v12, %v1531_v44 }
 0x29c   : > { %v1248_v0 = vpop.f32.mrf.mxu3 }
 0x29d   : > { %v1268_v1 = vmul.f32 %v1261_v62, %v1248_v0  ;;  %v1549_v62 = vmax.f32 %v1542_v58, 0.0  ;;  %v2082_v0 = vld [vmem:[%s3092_s7 + $0x50] sm:$0xff] }
 0x29f   : > { %v2191_v2 = vpop.eup %2190  ;;  %v1282_v51 = vadd.f32 %v1275_v57, %v1268_v1  ;;  %2123 = vmatmul.msk.f32.gmra.mxu2 %vm622_vm0, %v1549_v62  ;;  %v1519_v57 = vpop.f32.mrf.mxu1  ;;  %v2214_v62 = vld [vmem:[%s2348_s29 + $0x10] sm:$0xff] }
 0x2a0   : > { %2112 = vmatmul.msk.f32.gmra.mxu0 %vm622_vm0, %v2191_v2  ;;  %v2089_v2 = vld [vmem:[%s3093_s8 + $0x50] sm:$0xff] }
 0x2a1   : > { %2192 = vtanh.f32 %v1282_v51  ;;  %v1532_v51 = vmul.f32 %v2921_v15, %v1519_v57  ;;  %v2090_v15 = vld [vmem:[%s3093_s8 + $0x58] sm:$0xff] }
 0x2a4   : > { %v1251_v11 = vpop.f32.mrf.mxu3 }
 0x2a5   : > { %v1269_v13 = vmul.f32 %v1262_v10, %v1251_v11  ;;  %v1543_v11 = vadd.f32 %v2926_v12, %v1532_v51 }
 0x2a7   : > { %v2193_v16 = vpop.eup %2192  ;;  %v1283_v17 = vadd.f32 %v1276_v63, %v1269_v13  ;;  %v1550_v14 = vmax.f32 %v1543_v11, 0.0 }
 0x2a8   : > { %2113 = vmatmul.msk.f32.gmra.mxu0 %vm622_vm0, %v2193_v16  ;;  %v2083_v16 = vld [vmem:[%s3092_s7 + $0x58] sm:$0xff] }
 0x2a9   : > { %2194 = vtanh.f32 %v1283_v17  ;;  %2124 = vmatmul.msk.f32.gmra.mxu2 %vm622_vm0, %v1550_v14 }
 0x2ac   : > { %v1254_v22 = vpop.f32.mrf.mxu3 }
 0x2ad   : > { %v1270_v26 = vmul.f32 %v1263_v19, %v1254_v22  ;;  %v2084_v19 = vld [vmem:[%s3092_s7 + $0x60] sm:$0xff] }
 0x2af   : > { %v2195_v3 = vpop.eup %2194  ;;  %v1284_v30 = vadd.f32 %v1277_v24, %v1270_v26 }
 0x2b0   : > { %2114 = vmatmul.msk.f32.gmra.mxu0 %vm622_vm0, %v2195_v3  ;;  %v2092_v3 = vld [vmem:[%s3093_s8 + $0x68] sm:$0x3f] }
 0x2b1   : > { %2196 = vtanh.f32 %v1284_v30 }
 0x2b7   : > { %v2197_v33 = vpop.eup %2196 }
 0x2b8   : > { %2115 = vmatmul.msk.f32.gmra.mxu0 %vm622_vm0, %v2197_v33 }
 0x2c0   : > { %v1424_v38 = vpop.f32.mrf.mxu2 }
 0x2c1   : > { %v1453_v40 = vmul.f32 %v2079_v20, %v1424_v38  ;;  %v1743_v20 = vld [vmem:[%s3098_s13] sm:$0xff] }
 0x2c2   : > { %v1757_v38 = vld [vmem:[%s3099_s14] sm:$0xff] }
 0x2c3   : > { %v1468_v41 = vadd.f32 %v2086_v39, %v1453_v40 }
 0x2c5   : > { %2198 = vtanh.f32 %v1468_v41 }
 0x2c8   : > { %v1427_v45 = vpop.f32.mrf.mxu2 }
 0x2c9   : > { %v1454_v48 = vmul.f32 %v2080_v43, %v1427_v45  ;;  %v1744_v45 = vld [vmem:[%s3098_s13 + $0x8] sm:$0xff] }
 0x2cb   : > { %v2199_v49 = vpop.eup %2198  ;;  %v1469_v50 = vadd.f32 %v2087_v46, %v1454_v48 }
 0x2cc   : > { %2102 = vmatmul.msk.f32.vlgmr.msrb.gmra.mxu3 %vm622_vm0, %v2199_v49 }
 0x2cd   : > { %2200 = vtanh.f32 %v1469_v50 }
 0x2d0   : > { %v1430_v55 = vpop.f32.mrf.mxu2 }
 0x2d1   : > { %v1455_v8 = vmul.f32 %v2081_v53, %v1430_v55  ;;  %v1745_v55 = vld [vmem:[%s3098_s13 + $0x10] sm:$0xff] }
 0x2d3   : > { %v2201_v60 = vpop.eup %2200  ;;  %v1470_v61 = vadd.f32 %v2088_v56, %v1455_v8  ;;  %v1759_v8 = vld [vmem:[%s3099_s14 + $0x10] sm:$0xff] }
 0x2d4   : > { %2103 = vmatmul.msk.f32.gmra.mxu3 %vm622_vm0, %v2201_v60 }
 0x2d5   : > { %2202 = vtanh.f32 %v1470_v61 }
 0x2d8   : > { %v1433_v1 = vpop.f32.mrf.mxu2 }
 0x2d9   : > { %v1456_v10 = vmul.f32 %v2082_v0, %v1433_v1  ;;  %v1746_v1 = vld [vmem:[%s3098_s13 + $0x18] sm:$0xff] }
 0x2db   : > { %v2203_v63 = vpop.eup %2202  ;;  %v1471_v13 = vadd.f32 %v2089_v2, %v1456_v10  ;;  %v1760_v10 = vld [vmem:[%s3099_s14 + $0x18] sm:$0xff] }
 0x2dc   : > { %2104 = vmatmul.msk.f32.gmra.mxu3 %vm622_vm0, %v2203_v63 }
 0x2dd   : > { %2204 = vtanh.f32 %v1471_v13 }
 0x2e0   : > { %v1436_v17 = vpop.f32.mrf.mxu2 }
 0x2e1   : > { %v1457_v59 = vmul.f32 %v2083_v16, %v1436_v17  ;;  %v2215_v16 = vld [vmem:[%s2348_s29 + $0x18] sm:$0xff] }
 0x2e3   : > { %v2205_v5 = vpop.eup %2204  ;;  %v1472_v12 = vadd.f32 %v2090_v15, %v1457_v59  ;;  %v1747_v59 = vld [vmem:[%s3098_s13 + $0x20] sm:$0xff] }
 0x2e4   : > { %2105 = vmatmul.msk.f32.gmra.mxu3 %vm622_vm0, %v2205_v5 }
 0x2e5   : > { %2206 = vtanh.f32 %v1472_v12  ;;  %v1761_v12 = vld [vmem:[%s3099_s14 + $0x20] sm:$0xff] }
 0x2e8   : > { %v1439_v21 = vpop.f32.mrf.mxu2 }
 0x2e9   : > { %v1458_v22 = vmul.f32 %v2084_v19, %v1439_v21 }
 0x2eb   : > { %v2207_v24 = vpop.eup %2206  ;;  %v1473_v23 = vadd.f32 %v2091_v18, %v1458_v22 }
 0x2ec   : > { %2106 = vmatmul.msk.f32.gmra.mxu3 %vm622_vm0, %v2207_v24 }
 0x2ed   : > { %2208 = vtanh.f32 %v1473_v23  ;;  %v2216_v23 = vld [vmem:[%s2348_s29 + $0x20] sm:$0xff] }
 0x2f0   : > { %v1442_v26 = vpop.f32.mrf.mxu2 }
 0x2f1   : > { %v1459_v30 = vmul.f32 %v2085_v25, %v1442_v26 }
 0x2f3   : > { %v2209_v27 = vpop.eup %2208  ;;  %v1474_v7 = vadd.f32 %v2092_v3, %v1459_v30  ;;  %v1748_v3 = vld [vmem:[%s3098_s13 + $0x28] sm:$0xff] }
 0x2f4   : > { %2107 = vmatmul.msk.f32.gmra.mxu3 %vm622_vm0, %v2209_v27  ;;  %v1762_v27 = vld [vmem:[%s3099_s14 + $0x28] sm:$0xff] }
 0x2f5   : > { %2210 = vtanh.f32 %v1474_v7 }
 0x2f8   : > { %v1715_v33 = vpop.f32.mrf.mxu2 }
 0x2fb   : > { %v2211_v28 = vpop.eup %2210 }
 0x2fc   : > { %2108 = vmatmul.msk.f32.gmra.mxu3 %vm622_vm0, %v2211_v28 }
 0x300   : > { %v1718_v36 = vpop.f32.mrf.mxu2 }
 0x305   : > { %v1653_v31 = vpop.f32.mrf.mxu0 }
 0x308   : > { %v1721_v41 = vpop.f32.mrf.mxu2 }
 0x30d   : > { %v1656_v35 = vpop.f32.mrf.mxu0 }
 0x310   : > { %v1724_v56 = vpop.f32.mrf.mxu2 }
 0x315   : > { %v1659_v29 = vpop.f32.mrf.mxu0 }
 0x318   : > { %v1727_v11 = vpop.f32.mrf.mxu2 }
 0x31d   : > { %v1662_v50 = vpop.f32.mrf.mxu0 }
 0x322   : > { %v1730_v18 = vpop.f32.mrf.mxu2 }
 0x325   : > { %v1665_v2 = vpop.f32.mrf.mxu0 }
 0x32d   : > { %v1668_v19 = vpop.f32.mrf.mxu0 }
 0x335   : > { %v1671_v28 = vpop.f32.mrf.mxu0 }
 0x34f   : > { %v1594_v37 = vpop.f32.mrf.mxu3 }
 0x350   : > { %v1654_v9 = vadd.f32 %v1653_v31, %v1594_v37 }
 0x352   : > { %v1736_v32 = vadd.f32 %v1715_v33, %v1654_v9 }
 0x354   : > { %v1750_v39 = vmul.f32 %v1743_v20, %v1736_v32  ;;  %v1749_v20 = vld [vmem:[%s3098_s13 + $0x30] sm:$0x3f] }
 0x356   : > { %v1764_v40 = vadd.f32 %v1757_v38, %v1750_v39  ;;  %v1763_v38 = vld [vmem:[%s3099_s14 + $0x30] sm:$0x3f] }
 0x357   : > { %v1597_v4 = vpop.f32.mrf.mxu3 }
 0x358   : > { %v1771_v43 = vadd.f32 %v2212_v42, %v1764_v40  ;;  %v1657_v34 = vadd.f32 %v1656_v35, %v1597_v4  ;;  %v1733_v35 = vpop.f32.mrf.mxu2  ;;  %v2218_v40 = vld [vmem:[%s2348_s29 + $0x30] sm:$0x3f] }
 0x35a   : > { %1778 = vst.msk [vmem:[%s3023_s24] sm:$0xff] %vm622_vm0, %v1771_v43  ;;  %v1737_v46 = vadd.f32 %v1718_v36, %v1657_v34  ;;  %v2217_v36 = vld [vmem:[%s2348_s29 + $0x28] sm:$0xff] }
 0x35c   : > { %v1751_v48 = vmul.f32 %v1744_v45, %v1737_v46 }
 0x35e   : > { %v1765_v6 = vadd.f32 %v1758_v47, %v1751_v48 }
 0x35f   : > { %v1600_v49 = vpop.f32.mrf.mxu3 }
 0x360   : > { %v1772_v53 = vadd.f32 %v2213_v52, %v1765_v6  ;;  %v1660_v54 = vadd.f32 %v1659_v29, %v1600_v49 }
 0x362   : > { %1779 = vst.msk [vmem:[%s3023_s24 + $0x8] sm:$0xff] %vm622_vm0, %v1772_v53  ;;  %v1738_v44 = vadd.f32 %v1721_v41, %v1660_v54 }
 0x364   : > { %v1752_v58 = vmul.f32 %v1745_v55, %v1738_v44 }
 0x366   : > { %v1766_v60 = vadd.f32 %v1759_v8, %v1752_v58 }
 0x367   : > { %v1603_v61 = vpop.f32.mrf.mxu3 }
 0x368   : > { %v1773_v0 = vadd.f32 %v2214_v62, %v1766_v60  ;;  %v1663_v57 = vadd.f32 %v1662_v50, %v1603_v61 }
 0x36a   : > { %1780 = vst.msk [vmem:[%s3023_s24 + $0x10] sm:$0xff] %vm622_vm0, %v1773_v0  ;;  %v1739_v51 = vadd.f32 %v1724_v56, %v1663_v57 }
 0x36c   : > { %v1753_v63 = vmul.f32 %v1746_v1, %v1739_v51 }
 0x36e   : > { %v1767_v13 = vadd.f32 %v1760_v10, %v1753_v63 }
 0x36f   : > { %v1606_v14 = vpop.f32.mrf.mxu3 }
 0x370   : > { %v1774_v17 = vadd.f32 %v2215_v16, %v1767_v13  ;;  %v1666_v15 = vadd.f32 %v1665_v2, %v1606_v14 }
 0x372   : > { %1781 = vst.msk [vmem:[%s3023_s24 + $0x18] sm:$0xff] %vm622_vm0, %v1774_v17  ;;  %v1740_v5 = vadd.f32 %v1727_v11, %v1666_v15 }
 0x374   : > { %v1754_v21 = vmul.f32 %v1747_v59, %v1740_v5 }
 0x376   : > { %v1768_v22 = vadd.f32 %v1761_v12, %v1754_v21 }
 0x377   : > { %v1609_v24 = vpop.f32.mrf.mxu3 }
 0x378   : > { %v1775_v25 = vadd.f32 %v2216_v23, %v1768_v22  ;;  %v1669_v26 = vadd.f32 %v1668_v19, %v1609_v24 }
 0x37a   : > { %1782 = vst.msk [vmem:[%s3023_s24 + $0x20] sm:$0xff] %vm622_vm0, %v1775_v25  ;;  %v1741_v30 = vadd.f32 %v1730_v18, %v1669_v26 }
 0x37c   : > { %v1755_v7 = vmul.f32 %v1748_v3, %v1741_v30 }
 0x37e   : > { %v1769_v31 = vadd.f32 %v1762_v27, %v1755_v7 }
 0x37f   : > { %v1612_v33 = vpop.f32.mrf.mxu3 }
 0x380   : > { %v1776_v37 = vadd.f32 %v2217_v36, %v1769_v31  ;;  %v1672_v9 = vadd.f32 %v1671_v28, %v1612_v33 }
 0x382   : > { %1783 = vst.msk [vmem:[%s3023_s24 + $0x28] sm:$0xff] %vm622_vm0, %v1776_v37  ;;  %v1742_v32 = vadd.f32 %v1733_v35, %v1672_v9 }
 0x384   : > { %v1756_v39 = vmul.f32 %v1749_v20, %v1742_v32 }
 0x386   : > { %v1770_v29 = vadd.f32 %v1763_v38, %v1756_v39 }
 0x388   : > { %v1777_v4 = vadd.f32 %v2218_v40, %v1770_v29 }
 0x38a   : > { %1784 = vst.msk [vmem:[%s3023_s24 + $0x30] sm:$0x3f] %vm1090_vm3, %v1777_v4 }
 0x38b PF: > { %s29_s27 = sadd.s32 1, %s2225_s27  }
 0x38c   : > { %p26_p4 = scmp.ge.s32.totalorder %s29_s27, 4  }
 0x38e   :  { %28 = sbr.rel (!%p26_p4) target bundleno = 4 (0x4), region = 160 }

</bundles_post_ra>
